<compile_context>
chip_gen: v6e
topology: v6e:2x2x1
jax: 0.10.0
libtpu: 0.0.40
codegen_flags: <defaults>
</compile_context>

<pallas_src>
import functools
import math

import jax
import jax.numpy as jnp
from jax import lax
from jax.experimental import pallas as pl
from jax.experimental.pallas import tpu as pltpu


# ----------------------------------------------------------------------------- #
# Fused per-layer kernel
# ----------------------------------------------------------------------------- #
def _layernorm(x, gamma, beta, eps=1e-5):
    # PyTorch LayerNorm: biased variance, eps=1e-5
    mu = jnp.mean(x, axis=-1, keepdims=True)
    var = jnp.mean((x - mu) * (x - mu), axis=-1, keepdims=True)
    return (x - mu) * lax.rsqrt(var + eps) * gamma + beta


def layer_kernel(x_ref,
                 ag_ref, ab_ref, wqkv_ref, wo_ref, bo_ref,
                 fg_ref, fb_ref, w1_ref, b1_ref, w2_ref, b2_ref,
                 o_ref, *, heads, dim_head, scale, compute_dtype):
    """One full transformer layer for a (block_b, N, D) slab of the batch."""
    cdt = compute_dtype
    bb, n, d = x_ref.shape
    r = bb * n
    dh = dim_head
    inner = heads * dh
    hb = heads * bb

    x = x_ref[...].astype(jnp.float32).reshape(r, d)          # (R, D) residual stream

    # ---------------- Residual(PreNorm(Attention)) ----------------
    xn = _layernorm(x, ag_ref[0], ab_ref[0])
    # single wide qkv projection (one big MXU matmul, f32 accumulation)
    qkv = jnp.dot(xn.astype(cdt), wqkv_ref[...],
                  preferred_element_type=jnp.float32)          # (R, 3*inner) f32

    # rearrange 'b n (h d) -> (h b) n d' — static slices + one stack; no matmuls here.
    def heads_major(base):
        parts = [qkv[b * n:(b + 1) * n, base + h * dh: base + (h + 1) * dh]
                 for h in range(heads) for b in range(bb)]
        return jnp.stack(parts, axis=0).astype(cdt)            # (HB, N, dh)

    q = heads_major(0)
    k = heads_major(inner)
    v = heads_major(2 * inner)

    # head-batched attention on the MXU
    dots = jnp.einsum('bqd,bkd->bqk', q, k,
                      preferred_element_type=jnp.float32) * scale      # (HB, N, N) f32
    dots = dots - jnp.max(dots, axis=-1, keepdims=True)
    e = jnp.exp(dots)
    p = e * pl.reciprocal(jnp.sum(e, axis=-1, keepdims=True), approx=True)
    ctx = jnp.einsum('bqk,bkd->bqd', p.astype(cdt), v,
                     preferred_element_type=jnp.float32)                # (HB, N, dh)

    # output projection: out = sum_h ctx_h @ Wo[h]  (batched over heads, reduced over h)
    wo = wo_ref[...]                                            # (heads, dh, D)
    if bb > 1:
        wo = jnp.broadcast_to(wo[:, None], (heads, bb, dh, d)).reshape(hb, dh, d)
    proj = jnp.einsum('bnd,bdk->bnk', ctx.astype(cdt), wo,
                      preferred_element_type=jnp.float32)       # (HB, N, D)
    proj = jnp.sum(proj.reshape(heads, bb, n, d), axis=0) + bo_ref[0]   # (bb, N, D)
    x = x + proj.reshape(r, d)                                  # residual 1

    # ---------------- Residual(PreNorm(FeedForward)) ----------------
    xn = _layernorm(x, fg_ref[0], fb_ref[0])
    h1 = jnp.dot(xn.astype(cdt), w1_ref[...],
                 preferred_element_type=jnp.float32) + b1_ref[0]
    # exact GELU (PyTorch nn.GELU default): 0.5 * x * (1 + erf(x / sqrt(2)))
    h1 = 0.5 * h1 * (1.0 + lax.erf(h1 * (1.0 / math.sqrt(2.0))))
    y = jnp.dot(h1.astype(cdt), w2_ref[...],
                preferred_element_type=jnp.float32) + b2_ref[0]

    o_ref[...] = (x + y).reshape(bb, n, d).astype(o_ref.dtype)  # residual 2


# ----------------------------------------------------------------------------- #
# pallas_call wrapper
# ----------------------------------------------------------------------------- #
def _rep(arr):
    """Replicated (grid-invariant) full-array BlockSpec."""
    nd = arr.ndim
    return pl.BlockSpec(tuple(arr.shape), lambda i, *, _nd=nd: (0,) * _nd)


def _pick_block_b(batch, n_tokens, target_rows=256):
    """Largest divisor of `batch` keeping ~<=target_rows tokens per grid step."""
    bb = 1
    for cand in range(1, batch + 1):
        if batch % cand == 0 and cand * n_tokens <= max(target_rows, n_tokens):
            bb = cand
    return bb


def fused_layer(x, attn_p, ff_p, *, heads, dim_head, scale, block_b,
                compute_dtype=jnp.bfloat16, vmem_limit_bytes=None):
    B, N, D = x.shape
    inner = heads * dim_head
    H = ff_p["w1"].shape[1]
    assert B % block_b == 0

    kern = functools.partial(layer_kernel, heads=heads, dim_head=dim_head,
                             scale=scale, compute_dtype=compute_dtype)

    # advisory cost estimate so XLA can schedule neighboring ops around the call
    flops = (2 * B * N * D * 3 * inner            # qkv projection
             + 4 * B * heads * N * N * dim_head   # QK^T + PV
             + 2 * B * N * inner * D              # output projection
             + 4 * B * N * D * H)                 # FF linears
    transcendentals = B * heads * N * N + B * N * H        # softmax exp + gelu erf
    wbytes = sum(int(a.size) * a.dtype.itemsize
                 for a in (attn_p["wqkv"], attn_p["wo"], ff_p["w1"], ff_p["w2"]))
    bytes_accessed = 2 * int(x.size) * x.dtype.itemsize + wbytes
    cost = pl.CostEstimate(flops=int(flops), transcendentals=int(transcendentals),
                           bytes_accessed=int(bytes_accessed))

    cp_kwargs = dict(dimension_semantics=("parallel",))
    if vmem_limit_bytes is not None:
        cp_kwargs["vmem_limit_bytes"] = vmem_limit_bytes

    params = (attn_p["ln_g"], attn_p["ln_b"], attn_p["wqkv"], attn_p["wo"], attn_p["bo"],
              ff_p["ln_g"], ff_p["ln_b"], ff_p["w1"], ff_p["b1"], ff_p["w2"], ff_p["b2"])

    return pl.pallas_call(
        kern,
        out_shape=jax.ShapeDtypeStruct((B, N, D), x.dtype),
        grid=(B // block_b,),
        in_specs=[pl.BlockSpec((block_b, N, D), lambda i: (i, 0, 0))]
                 + [_rep(a) for a in params],
        out_specs=pl.BlockSpec((block_b, N, D), lambda i: (i, 0, 0)),
        input_output_aliases={0: 0},
        compiler_params=pltpu.CompilerParams(**cp_kwargs),
        cost_estimate=cost,
    )(x, *params)


def transformer_forward(x, layer_params, *, heads, dim_head, scale,
                        block_b=None, compute_dtype=jnp.bfloat16,
                        vmem_limit_bytes=None):
    B, N, _ = x.shape
    if block_b is None:
        block_b = _pick_block_b(B, N)
    for attn_p, ff_p in layer_params:
        x = fused_layer(x, attn_p, ff_p, heads=heads, dim_head=dim_head,
                        scale=scale, block_b=block_b,
                        compute_dtype=compute_dtype,
                        vmem_limit_bytes=vmem_limit_bytes)
    return x


# ----------------------------------------------------------------------------- #
# Deterministic parameter construction (PyTorch-style Linear init, LN = ones/zeros)
# ----------------------------------------------------------------------------- #
def _linear_wT(key, in_f, out_f):
    # PyTorch Linear: weight (out,in) ~ U(-k,k), k=1/sqrt(in).  Stored transposed (in,out).
    k = 1.0 / math.sqrt(in_f)
    w = jax.random.uniform(key, (out_f, in_f), jnp.float32, -k, k)
    return jnp.transpose(w)


def _linear_b(key, in_f, out_f):
    k = 1.0 / math.sqrt(in_f)
    return jax.random.uniform(key, (1, out_f), jnp.float32, -k, k)


def make_params(key, dim, depth, heads, dim_head, mlp_dim,
                compute_dtype=jnp.bfloat16):
    inner = heads * dim_head
    layers = []
    for _ in range(depth):
        key, k1, k2, k3, k4, k5, k6, k7 = jax.random.split(key, 8)
        attn_p = {
            "ln_g": jnp.ones((1, dim), jnp.float32),
            "ln_b": jnp.zeros((1, dim), jnp.float32),
            # to_qkv (bias=False): (dim, 3*inner), stored in MXU compute dtype
            "wqkv": _linear_wT(k1, dim, inner * 3).astype(compute_dtype),
            # to_out weight stored per-head: (heads, dim_head, dim)
            "wo": _linear_wT(k2, inner, dim).reshape(heads, dim_head, dim).astype(compute_dtype),
            "bo": _linear_b(k3, inner, dim),
        }
        ff_p = {
            "ln_g": jnp.ones((1, dim), jnp.float32),
            "ln_b": jnp.zeros((1, dim), jnp.float32),
            "w1": _linear_wT(k4, dim, mlp_dim).astype(compute_dtype),
            "b1": _linear_b(k5, dim, mlp_dim),
            "w2": _linear_wT(k6, mlp_dim, dim).astype(compute_dtype),
            "b2": _linear_b(k7, mlp_dim, dim),
        }
        layers.append((attn_p, ff_p))
    return layers


# ----------------------------------------------------------------------------- #
# Pure-JAX reference (f32 activations) for a correctness check
# ----------------------------------------------------------------------------- #
def transformer_reference(x, layer_params, *, heads, scale):
    f32 = jnp.float32

    def ln(z, g, b):
        mu = jnp.mean(z, -1, keepdims=True)
        var = jnp.mean((z - mu) ** 2, -1, keepdims=True)
        return (z - mu) * lax.rsqrt(var + 1e-5) * g + b

    x = x.astype(f32)
    B, N, D = x.shape
    for ap, fp in layer_params:
        xn = ln(x, ap["ln_g"][0], ap["ln_b"][0])
        qkv = xn @ ap["wqkv"].astype(f32)
        inner = qkv.shape[-1] // 3
        dh = inner // heads
        q, k, v = jnp.split(qkv, 3, axis=-1)
        sh = lambda t: t.reshape(B, N, heads, dh).transpose(0, 2, 1, 3)
        q, k, v = sh(q), sh(k), sh(v)
        dots = jnp.einsum('bhid,bhjd->bhij', q, k) * scale
        attn = jax.nn.softmax(dots, axis=-1)
        ctx = jnp.einsum('bhij,bhjd->bhid', attn, v)
        ctx = ctx.transpose(0, 2, 1, 3).reshape(B, N, inner)
        x = x + ctx @ ap["wo"].astype(f32).reshape(inner, D) + ap["bo"][0]
        xn = ln(x, fp["ln_g"][0], fp["ln_b"][0])
        h = xn @ fp["w1"].astype(f32) + fp["b1"][0]
        h = 0.5 * h * (1.0 + lax.erf(h * (1.0 / math.sqrt(2.0))))
        x = x + h @ fp["w2"].astype(f32) + fp["b2"][0]
    return x


# ----------------------------------------------------------------------------- #
if __name__ == "__main__":
    # Small shapes consistent with the module
    B, N = 2, 8
    dim, depth, heads, dim_head, mlp_dim = 32, 2, 4, 8, 64
    dropout = 0.0  # Dropout(p=0) == identity

    key = jax.random.PRNGKey(0)
    kx, kp = jax.random.split(key)
    x = jax.random.normal(kx, (B, N, dim), dtype=jnp.float32)

    params = make_params(kp, dim, depth, heads, dim_head, mlp_dim)
    scale = dim ** (-0.5)  # note: the PyTorch module scales by dim**-0.5 (not dim_head)

    fwd = jax.jit(functools.partial(transformer_forward, heads=heads,
                                    dim_head=dim_head, scale=scale))
    out = jax.block_until_ready(fwd(x, params))

    ref = transformer_reference(x, params, heads=heads, scale=scale)
    assert out.shape == (B, N, dim)
    assert bool(jnp.all(jnp.isfinite(out)))
    max_err = float(jnp.max(jnp.abs(out.astype(jnp.float32) - ref)))
    assert max_err < 1e-1, f"max abs err vs reference too large: {max_err}"
    print("KERNEL_OK")
</pallas_src>

<mosaic_0001>
module attributes {stable_mosaic.version = 11 : i64} {
  func.func @layer_kernel(%arg0: i32, %arg1: memref<2x8x32xf32, #tpu.memory_space<vmem>>, %arg2: memref<1x32xf32, #tpu.memory_space<vmem>>, %arg3: memref<1x32xf32, #tpu.memory_space<vmem>>, %arg4: memref<32x96xbf16, #tpu.memory_space<vmem>>, %arg5: memref<4x8x32xbf16, #tpu.memory_space<vmem>>, %arg6: memref<1x32xf32, #tpu.memory_space<vmem>>, %arg7: memref<1x32xf32, #tpu.memory_space<vmem>>, %arg8: memref<1x32xf32, #tpu.memory_space<vmem>>, %arg9: memref<32x64xbf16, #tpu.memory_space<vmem>>, %arg10: memref<1x64xf32, #tpu.memory_space<vmem>>, %arg11: memref<64x32xbf16, #tpu.memory_space<vmem>>, %arg12: memref<1x32xf32, #tpu.memory_space<vmem>>, %arg13: memref<2x8x32xf32, #tpu.memory_space<vmem>>) attributes {dimension_semantics = [#tpu.dimension_semantics<parallel>], iteration_bounds = array<i64: 1>, scalar_prefetch = 0 : i64, scratch_operands = 0 : i64, tpu.core_type = #tpu.core_type<tc>, window_params = [{transform_indices = @transform_0, window_bounds = array<i64: 2, 8, 32>}, {pipeline_mode = #tpu.pipeline_mode<synchronous>, transform_indices = @transform_1, window_bounds = array<i64: 1, 32>}, {pipeline_mode = #tpu.pipeline_mode<synchronous>, transform_indices = @transform_2, window_bounds = array<i64: 1, 32>}, {pipeline_mode = #tpu.pipeline_mode<synchronous>, transform_indices = @transform_3, window_bounds = array<i64: 32, 96>}, {pipeline_mode = #tpu.pipeline_mode<synchronous>, transform_indices = @transform_4, window_bounds = array<i64: 4, 8, 32>}, {pipeline_mode = #tpu.pipeline_mode<synchronous>, transform_indices = @transform_5, window_bounds = array<i64: 1, 32>}, {pipeline_mode = #tpu.pipeline_mode<synchronous>, transform_indices = @transform_6, window_bounds = array<i64: 1, 32>}, {pipeline_mode = #tpu.pipeline_mode<synchronous>, transform_indices = @transform_7, window_bounds = array<i64: 1, 32>}, {pipeline_mode = #tpu.pipeline_mode<synchronous>, transform_indices = @transform_8, window_bounds = array<i64: 32, 64>}, {pipeline_mode = #tpu.pipeline_mode<synchronous>, transform_indices = @transform_9, window_bounds = array<i64: 1, 64>}, {pipeline_mode = #tpu.pipeline_mode<synchronous>, transform_indices = @transform_10, window_bounds = array<i64: 64, 32>}, {pipeline_mode = #tpu.pipeline_mode<synchronous>, transform_indices = @transform_11, window_bounds = array<i64: 1, 32>}, {transform_indices = @transform_12, window_bounds = array<i64: 2, 8, 32>}]} {
    %c0 = arith.constant 0 : index
    %c0_0 = arith.constant 0 : index
    %c0_1 = arith.constant 0 : index
    %0 = vector.load %arg1[%c0, %c0_0, %c0_1] : memref<2x8x32xf32, #tpu.memory_space<vmem>>, vector<2x8x32xf32>
    %1 = vector.shape_cast %0 : vector<2x8x32xf32> to vector<16x32xf32>
    %c0_2 = arith.constant 0 : index
    %c0_3 = arith.constant 0 : index
    %2 = vector.load %arg2[%c0_2, %c0_3] : memref<1x32xf32, #tpu.memory_space<vmem>>, vector<1x32xf32>
    %3 = vector.shape_cast %2 : vector<1x32xf32> to vector<32xf32>
    %c0_4 = arith.constant 0 : index
    %c0_5 = arith.constant 0 : index
    %4 = vector.load %arg3[%c0_4, %c0_5] : memref<1x32xf32, #tpu.memory_space<vmem>>, vector<1x32xf32>
    %5 = vector.shape_cast %4 : vector<1x32xf32> to vector<32xf32>
    %cst = arith.constant dense<0.000000e+00> : vector<16xf32>
    %6 = vector.multi_reduction <add>, %1, %cst [1] : vector<16x32xf32> to vector<16xf32>
    %7 = vector.shape_cast %6 : vector<16xf32> to vector<16x1xf32>
    %cst_6 = arith.constant 3.200000e+01 : f32
    %8 = vector.broadcast %cst_6 : f32 to vector<16x1xf32>
    %9 = arith.divf %7, %8 : vector<16x1xf32>
    %10 = vector.broadcast %9 : vector<16x1xf32> to vector<16x32xf32>
    %11 = arith.subf %1, %10 : vector<16x32xf32>
    %12 = vector.broadcast %9 : vector<16x1xf32> to vector<16x32xf32>
    %13 = arith.subf %1, %12 : vector<16x32xf32>
    %14 = arith.mulf %11, %13 : vector<16x32xf32>
    %cst_7 = arith.constant dense<0.000000e+00> : vector<16xf32>
    %15 = vector.multi_reduction <add>, %14, %cst_7 [1] : vector<16x32xf32> to vector<16xf32>
    %16 = vector.shape_cast %15 : vector<16xf32> to vector<16x1xf32>
    %cst_8 = arith.constant 3.200000e+01 : f32
    %17 = vector.broadcast %cst_8 : f32 to vector<16x1xf32>
    %18 = arith.divf %16, %17 : vector<16x1xf32>
    %19 = vector.broadcast %9 : vector<16x1xf32> to vector<16x32xf32>
    %20 = arith.subf %1, %19 : vector<16x32xf32>
    %cst_9 = arith.constant 9.99999974E-6 : f32
    %21 = vector.broadcast %cst_9 : f32 to vector<16x1xf32>
    %22 = arith.addf %18, %21 : vector<16x1xf32>
    %23 = math.rsqrt %22 : vector<16x1xf32>
    %24 = vector.broadcast %23 : vector<16x1xf32> to vector<16x32xf32>
    %25 = arith.mulf %20, %24 : vector<16x32xf32>
    %26 = vector.shape_cast %3 : vector<32xf32> to vector<1x32xf32>
    %27 = vector.broadcast %26 : vector<1x32xf32> to vector<16x32xf32>
    %28 = arith.mulf %25, %27 : vector<16x32xf32>
    %29 = vector.shape_cast %5 : vector<32xf32> to vector<1x32xf32>
    %30 = vector.broadcast %29 : vector<1x32xf32> to vector<16x32xf32>
    %31 = arith.addf %28, %30 : vector<16x32xf32>
    %32 = arith.truncf %31 : vector<16x32xf32> to vector<16x32xbf16>
    %c0_10 = arith.constant 0 : index
    %c0_11 = arith.constant 0 : index
    %33 = vector.load %arg4[%c0_10, %c0_11] : memref<32x96xbf16, #tpu.memory_space<vmem>>, vector<32x96xbf16>
    %cst_12 = arith.constant dense<0.000000e+00> : vector<16x96xf32>
    %34 = tpu.matmul %32, %33, %cst_12 {dimension_numbers = #tpu.dot_dimension_numbers<[1], [0], [0], [1], [0, 0, 1, 1], [], []>} : vector<16x32xbf16>, vector<32x96xbf16>, vector<16x96xf32> -> vector<16x96xf32>
    %35 = vector.extract_strided_slice %34 {offsets = [0, 0], sizes = [8, 8], strides = [1, 1]} : vector<16x96xf32> to vector<8x8xf32>
    %36 = vector.extract_strided_slice %34 {offsets = [8, 0], sizes = [8, 8], strides = [1, 1]} : vector<16x96xf32> to vector<8x8xf32>
    %37 = vector.extract_strided_slice %34 {offsets = [0, 8], sizes = [8, 8], strides = [1, 1]} : vector<16x96xf32> to vector<8x8xf32>
    %38 = vector.extract_strided_slice %34 {offsets = [8, 8], sizes = [8, 8], strides = [1, 1]} : vector<16x96xf32> to vector<8x8xf32>
    %39 = vector.extract_strided_slice %34 {offsets = [0, 16], sizes = [8, 8], strides = [1, 1]} : vector<16x96xf32> to vector<8x8xf32>
    %40 = vector.extract_strided_slice %34 {offsets = [8, 16], sizes = [8, 8], strides = [1, 1]} : vector<16x96xf32> to vector<8x8xf32>
    %41 = vector.extract_strided_slice %34 {offsets = [0, 24], sizes = [8, 8], strides = [1, 1]} : vector<16x96xf32> to vector<8x8xf32>
    %42 = vector.extract_strided_slice %34 {offsets = [8, 24], sizes = [8, 8], strides = [1, 1]} : vector<16x96xf32> to vector<8x8xf32>
    %43 = vector.shape_cast %35 : vector<8x8xf32> to vector<1x8x8xf32>
    %44 = vector.shape_cast %36 : vector<8x8xf32> to vector<1x8x8xf32>
    %45 = vector.shape_cast %37 : vector<8x8xf32> to vector<1x8x8xf32>
    %46 = vector.shape_cast %38 : vector<8x8xf32> to vector<1x8x8xf32>
    %47 = vector.shape_cast %39 : vector<8x8xf32> to vector<1x8x8xf32>
    %48 = vector.shape_cast %40 : vector<8x8xf32> to vector<1x8x8xf32>
    %49 = vector.shape_cast %41 : vector<8x8xf32> to vector<1x8x8xf32>
    %50 = vector.shape_cast %42 : vector<8x8xf32> to vector<1x8x8xf32>
    %51 = tpu.concatenate %43, %44, %45, %46, %47, %48, %49, %50 in 0 : vector<1x8x8xf32>, vector<1x8x8xf32>, vector<1x8x8xf32>, vector<1x8x8xf32>, vector<1x8x8xf32>, vector<1x8x8xf32>, vector<1x8x8xf32>, vector<1x8x8xf32> -> vector<8x8x8xf32>
    %52 = arith.truncf %51 : vector<8x8x8xf32> to vector<8x8x8xbf16>
    %53 = vector.extract_strided_slice %34 {offsets = [0, 32], sizes = [8, 8], strides = [1, 1]} : vector<16x96xf32> to vector<8x8xf32>
    %54 = vector.extract_strided_slice %34 {offsets = [8, 32], sizes = [8, 8], strides = [1, 1]} : vector<16x96xf32> to vector<8x8xf32>
    %55 = vector.extract_strided_slice %34 {offsets = [0, 40], sizes = [8, 8], strides = [1, 1]} : vector<16x96xf32> to vector<8x8xf32>
    %56 = vector.extract_strided_slice %34 {offsets = [8, 40], sizes = [8, 8], strides = [1, 1]} : vector<16x96xf32> to vector<8x8xf32>
    %57 = vector.extract_strided_slice %34 {offsets = [0, 48], sizes = [8, 8], strides = [1, 1]} : vector<16x96xf32> to vector<8x8xf32>
    %58 = vector.extract_strided_slice %34 {offsets = [8, 48], sizes = [8, 8], strides = [1, 1]} : vector<16x96xf32> to vector<8x8xf32>
    %59 = vector.extract_strided_slice %34 {offsets = [0, 56], sizes = [8, 8], strides = [1, 1]} : vector<16x96xf32> to vector<8x8xf32>
    %60 = vector.extract_strided_slice %34 {offsets = [8, 56], sizes = [8, 8], strides = [1, 1]} : vector<16x96xf32> to vector<8x8xf32>
    %61 = vector.shape_cast %53 : vector<8x8xf32> to vector<1x8x8xf32>
    %62 = vector.shape_cast %54 : vector<8x8xf32> to vector<1x8x8xf32>
    %63 = vector.shape_cast %55 : vector<8x8xf32> to vector<1x8x8xf32>
    %64 = vector.shape_cast %56 : vector<8x8xf32> to vector<1x8x8xf32>
    %65 = vector.shape_cast %57 : vector<8x8xf32> to vector<1x8x8xf32>
    %66 = vector.shape_cast %58 : vector<8x8xf32> to vector<1x8x8xf32>
    %67 = vector.shape_cast %59 : vector<8x8xf32> to vector<1x8x8xf32>
    %68 = vector.shape_cast %60 : vector<8x8xf32> to vector<1x8x8xf32>
    %69 = tpu.concatenate %61, %62, %63, %64, %65, %66, %67, %68 in 0 : vector<1x8x8xf32>, vector<1x8x8xf32>, vector<1x8x8xf32>, vector<1x8x8xf32>, vector<1x8x8xf32>, vector<1x8x8xf32>, vector<1x8x8xf32>, vector<1x8x8xf32> -> vector<8x8x8xf32>
    %70 = arith.truncf %69 : vector<8x8x8xf32> to vector<8x8x8xbf16>
    %71 = vector.extract_strided_slice %34 {offsets = [0, 64], sizes = [8, 8], strides = [1, 1]} : vector<16x96xf32> to vector<8x8xf32>
    %72 = vector.extract_strided_slice %34 {offsets = [8, 64], sizes = [8, 8], strides = [1, 1]} : vector<16x96xf32> to vector<8x8xf32>
    %73 = vector.extract_strided_slice %34 {offsets = [0, 72], sizes = [8, 8], strides = [1, 1]} : vector<16x96xf32> to vector<8x8xf32>
    %74 = vector.extract_strided_slice %34 {offsets = [8, 72], sizes = [8, 8], strides = [1, 1]} : vector<16x96xf32> to vector<8x8xf32>
    %75 = vector.extract_strided_slice %34 {offsets = [0, 80], sizes = [8, 8], strides = [1, 1]} : vector<16x96xf32> to vector<8x8xf32>
    %76 = vector.extract_strided_slice %34 {offsets = [8, 80], sizes = [8, 8], strides = [1, 1]} : vector<16x96xf32> to vector<8x8xf32>
    %77 = vector.extract_strided_slice %34 {offsets = [0, 88], sizes = [8, 8], strides = [1, 1]} : vector<16x96xf32> to vector<8x8xf32>
    %78 = vector.extract_strided_slice %34 {offsets = [8, 88], sizes = [8, 8], strides = [1, 1]} : vector<16x96xf32> to vector<8x8xf32>
    %79 = vector.shape_cast %71 : vector<8x8xf32> to vector<1x8x8xf32>
    %80 = vector.shape_cast %72 : vector<8x8xf32> to vector<1x8x8xf32>
    %81 = vector.shape_cast %73 : vector<8x8xf32> to vector<1x8x8xf32>
    %82 = vector.shape_cast %74 : vector<8x8xf32> to vector<1x8x8xf32>
    %83 = vector.shape_cast %75 : vector<8x8xf32> to vector<1x8x8xf32>
    %84 = vector.shape_cast %76 : vector<8x8xf32> to vector<1x8x8xf32>
    %85 = vector.shape_cast %77 : vector<8x8xf32> to vector<1x8x8xf32>
    %86 = vector.shape_cast %78 : vector<8x8xf32> to vector<1x8x8xf32>
    %87 = tpu.concatenate %79, %80, %81, %82, %83, %84, %85, %86 in 0 : vector<1x8x8xf32>, vector<1x8x8xf32>, vector<1x8x8xf32>, vector<1x8x8xf32>, vector<1x8x8xf32>, vector<1x8x8xf32>, vector<1x8x8xf32>, vector<1x8x8xf32> -> vector<8x8x8xf32>
    %88 = arith.truncf %87 : vector<8x8x8xf32> to vector<8x8x8xbf16>
    "tpu.trace_start"() <{level = 10 : i32, message = "bqd,bkd->bqk"}> : () -> ()
    %cst_13 = arith.constant dense<0.000000e+00> : vector<8x8x8xf32>
    %89 = tpu.matmul %52, %70, %cst_13 {dimension_numbers = #tpu.dot_dimension_numbers<[2], [2], [1], [1], [0, 0, 0, 1, 1, 1], [0], [0]>} : vector<8x8x8xbf16>, vector<8x8x8xbf16>, vector<8x8x8xf32> -> vector<8x8x8xf32>
    "tpu.trace_stop"() : () -> ()
    %cst_14 = arith.constant 0.176776692 : f32
    %90 = vector.broadcast %cst_14 : f32 to vector<8x8x8xf32>
    %91 = arith.mulf %89, %90 : vector<8x8x8xf32>
    %cst_15 = arith.constant dense<0xFF800000> : vector<8x8xf32>
    %92 = vector.multi_reduction <maximumf>, %91, %cst_15 [2] : vector<8x8x8xf32> to vector<8x8xf32>
    %93 = vector.shape_cast %92 : vector<8x8xf32> to vector<8x8x1xf32>
    %94 = vector.broadcast %93 : vector<8x8x1xf32> to vector<8x8x8xf32>
    %95 = arith.subf %91, %94 : vector<8x8x8xf32>
    %96 = math.exp %95 : vector<8x8x8xf32>
    %cst_16 = arith.constant dense<0.000000e+00> : vector<8x8xf32>
    %97 = vector.multi_reduction <add>, %96, %cst_16 [2] : vector<8x8x8xf32> to vector<8x8xf32>
    %98 = vector.shape_cast %97 : vector<8x8xf32> to vector<8x8x1xf32>
    %99 = tpu.reciprocal %98 {approx = true} : vector<8x8x1xf32> -> vector<8x8x1xf32>
    %100 = vector.broadcast %99 : vector<8x8x1xf32> to vector<8x8x8xf32>
    %101 = arith.mulf %96, %100 : vector<8x8x8xf32>
    %102 = arith.truncf %101 : vector<8x8x8xf32> to vector<8x8x8xbf16>
    "tpu.trace_start"() <{level = 10 : i32, message = "bqk,bkd->bqd"}> : () -> ()
    %cst_17 = arith.constant dense<0.000000e+00> : vector<8x8x8xf32>
    %103 = tpu.matmul %102, %88, %cst_17 {dimension_numbers = #tpu.dot_dimension_numbers<[2], [1], [1], [2], [0, 0, 0, 1, 1, 2], [0], [0]>} : vector<8x8x8xbf16>, vector<8x8x8xbf16>, vector<8x8x8xf32> -> vector<8x8x8xf32>
    "tpu.trace_stop"() : () -> ()
    %c0_18 = arith.constant 0 : index
    %c0_19 = arith.constant 0 : index
    %c0_20 = arith.constant 0 : index
    %104 = vector.load %arg5[%c0_18, %c0_19, %c0_20] : memref<4x8x32xbf16, #tpu.memory_space<vmem>>, vector<4x8x32xbf16>
    %105 = vector.shape_cast %104 : vector<4x8x32xbf16> to vector<4x1x8x32xbf16>
    %106 = vector.shape_cast %105 : vector<4x1x8x32xbf16> to vector<4x1x8x32xbf16>
    %107 = vector.broadcast %106 : vector<4x1x8x32xbf16> to vector<4x2x8x32xbf16>
    %108 = vector.shape_cast %107 : vector<4x2x8x32xbf16> to vector<8x8x32xbf16>
    %109 = arith.truncf %103 : vector<8x8x8xf32> to vector<8x8x8xbf16>
    "tpu.trace_start"() <{level = 10 : i32, message = "bnd,bdk->bnk"}> : () -> ()
    %cst_21 = arith.constant dense<0.000000e+00> : vector<8x8x32xf32>
    %110 = tpu.matmul %109, %108, %cst_21 {dimension_numbers = #tpu.dot_dimension_numbers<[2], [1], [1], [2], [0, 0, 0, 1, 1, 2], [0], [0]>} : vector<8x8x8xbf16>, vector<8x8x32xbf16>, vector<8x8x32xf32> -> vector<8x8x32xf32>
    "tpu.trace_stop"() : () -> ()
    %111 = vector.shape_cast %110 : vector<8x8x32xf32> to vector<4x2x8x32xf32>
    %cst_22 = arith.constant dense<0.000000e+00> : vector<2x8x32xf32>
    %112 = vector.multi_reduction <add>, %111, %cst_22 [0] : vector<4x2x8x32xf32> to vector<2x8x32xf32>
    %c0_23 = arith.constant 0 : index
    %c0_24 = arith.constant 0 : index
    %113 = vector.load %arg6[%c0_23, %c0_24] : memref<1x32xf32, #tpu.memory_space<vmem>>, vector<1x32xf32>
    %114 = vector.shape_cast %113 : vector<1x32xf32> to vector<32xf32>
    %115 = vector.shape_cast %114 : vector<32xf32> to vector<1x1x32xf32>
    %116 = vector.broadcast %115 : vector<1x1x32xf32> to vector<2x8x32xf32>
    %117 = arith.addf %112, %116 : vector<2x8x32xf32>
    %118 = vector.shape_cast %117 : vector<2x8x32xf32> to vector<16x32xf32>
    %119 = arith.addf %1, %118 : vector<16x32xf32>
    %c0_25 = arith.constant 0 : index
    %c0_26 = arith.constant 0 : index
    %120 = vector.load %arg7[%c0_25, %c0_26] : memref<1x32xf32, #tpu.memory_space<vmem>>, vector<1x32xf32>
    %121 = vector.shape_cast %120 : vector<1x32xf32> to vector<32xf32>
    %c0_27 = arith.constant 0 : index
    %c0_28 = arith.constant 0 : index
    %122 = vector.load %arg8[%c0_27, %c0_28] : memref<1x32xf32, #tpu.memory_space<vmem>>, vector<1x32xf32>
    %123 = vector.shape_cast %122 : vector<1x32xf32> to vector<32xf32>
    %cst_29 = arith.constant dense<0.000000e+00> : vector<16xf32>
    %124 = vector.multi_reduction <add>, %119, %cst_29 [1] : vector<16x32xf32> to vector<16xf32>
    %125 = vector.shape_cast %124 : vector<16xf32> to vector<16x1xf32>
    %cst_30 = arith.constant 3.200000e+01 : f32
    %126 = vector.broadcast %cst_30 : f32 to vector<16x1xf32>
    %127 = arith.divf %125, %126 : vector<16x1xf32>
    %128 = vector.broadcast %127 : vector<16x1xf32> to vector<16x32xf32>
    %129 = arith.subf %119, %128 : vector<16x32xf32>
    %130 = vector.broadcast %127 : vector<16x1xf32> to vector<16x32xf32>
    %131 = arith.subf %119, %130 : vector<16x32xf32>
    %132 = arith.mulf %129, %131 : vector<16x32xf32>
    %cst_31 = arith.constant dense<0.000000e+00> : vector<16xf32>
    %133 = vector.multi_reduction <add>, %132, %cst_31 [1] : vector<16x32xf32> to vector<16xf32>
    %134 = vector.shape_cast %133 : vector<16xf32> to vector<16x1xf32>
    %cst_32 = arith.constant 3.200000e+01 : f32
    %135 = vector.broadcast %cst_32 : f32 to vector<16x1xf32>
    %136 = arith.divf %134, %135 : vector<16x1xf32>
    %137 = vector.broadcast %127 : vector<16x1xf32> to vector<16x32xf32>
    %138 = arith.subf %119, %137 : vector<16x32xf32>
    %cst_33 = arith.constant 9.99999974E-6 : f32
    %139 = vector.broadcast %cst_33 : f32 to vector<16x1xf32>
    %140 = arith.addf %136, %139 : vector<16x1xf32>
    %141 = math.rsqrt %140 : vector<16x1xf32>
    %142 = vector.broadcast %141 : vector<16x1xf32> to vector<16x32xf32>
    %143 = arith.mulf %138, %142 : vector<16x32xf32>
    %144 = vector.shape_cast %121 : vector<32xf32> to vector<1x32xf32>
    %145 = vector.broadcast %144 : vector<1x32xf32> to vector<16x32xf32>
    %146 = arith.mulf %143, %145 : vector<16x32xf32>
    %147 = vector.shape_cast %123 : vector<32xf32> to vector<1x32xf32>
    %148 = vector.broadcast %147 : vector<1x32xf32> to vector<16x32xf32>
    %149 = arith.addf %146, %148 : vector<16x32xf32>
    %150 = arith.truncf %149 : vector<16x32xf32> to vector<16x32xbf16>
    %c0_34 = arith.constant 0 : index
    %c0_35 = arith.constant 0 : index
    %151 = vector.load %arg9[%c0_34, %c0_35] : memref<32x64xbf16, #tpu.memory_space<vmem>>, vector<32x64xbf16>
    %cst_36 = arith.constant dense<0.000000e+00> : vector<16x64xf32>
    %152 = tpu.matmul %150, %151, %cst_36 {dimension_numbers = #tpu.dot_dimension_numbers<[1], [0], [0], [1], [0, 0, 1, 1], [], []>} : vector<16x32xbf16>, vector<32x64xbf16>, vector<16x64xf32> -> vector<16x64xf32>
    %c0_37 = arith.constant 0 : index
    %c0_38 = arith.constant 0 : index
    %153 = vector.load %arg10[%c0_37, %c0_38] : memref<1x64xf32, #tpu.memory_space<vmem>>, vector<1x64xf32>
    %154 = vector.shape_cast %153 : vector<1x64xf32> to vector<64xf32>
    %155 = vector.shape_cast %154 : vector<64xf32> to vector<1x64xf32>
    %156 = vector.broadcast %155 : vector<1x64xf32> to vector<16x64xf32>
    %157 = arith.addf %152, %156 : vector<16x64xf32>
    %cst_39 = arith.constant 5.000000e-01 : f32
    %158 = vector.broadcast %cst_39 : f32 to vector<16x64xf32>
    %159 = arith.mulf %158, %157 : vector<16x64xf32>
    %cst_40 = arith.constant 0.707106769 : f32
    %160 = vector.broadcast %cst_40 : f32 to vector<16x64xf32>
    %161 = arith.mulf %157, %160 : vector<16x64xf32>
    %162 = math.erf %161 : vector<16x64xf32>
    %cst_41 = arith.constant 1.000000e+00 : f32
    %163 = vector.broadcast %cst_41 : f32 to vector<16x64xf32>
    %164 = arith.addf %163, %162 : vector<16x64xf32>
    %165 = arith.mulf %159, %164 : vector<16x64xf32>
    %166 = arith.truncf %165 : vector<16x64xf32> to vector<16x64xbf16>
    %c0_42 = arith.constant 0 : index
    %c0_43 = arith.constant 0 : index
    %167 = vector.load %arg11[%c0_42, %c0_43] : memref<64x32xbf16, #tpu.memory_space<vmem>>, vector<64x32xbf16>
    %cst_44 = arith.constant dense<0.000000e+00> : vector<16x32xf32>
    %168 = tpu.matmul %166, %167, %cst_44 {dimension_numbers = #tpu.dot_dimension_numbers<[1], [0], [0], [1], [0, 0, 1, 1], [], []>} : vector<16x64xbf16>, vector<64x32xbf16>, vector<16x32xf32> -> vector<16x32xf32>
    %c0_45 = arith.constant 0 : index
    %c0_46 = arith.constant 0 : index
    %169 = vector.load %arg12[%c0_45, %c0_46] : memref<1x32xf32, #tpu.memory_space<vmem>>, vector<1x32xf32>
    %170 = vector.shape_cast %169 : vector<1x32xf32> to vector<32xf32>
    %171 = vector.shape_cast %170 : vector<32xf32> to vector<1x32xf32>
    %172 = vector.broadcast %171 : vector<1x32xf32> to vector<16x32xf32>
    %173 = arith.addf %168, %172 : vector<16x32xf32>
    %174 = arith.addf %119, %173 : vector<16x32xf32>
    %175 = vector.shape_cast %174 : vector<16x32xf32> to vector<2x8x32xf32>
    %c0_47 = arith.constant 0 : index
    %c0_48 = arith.constant 0 : index
    %c0_49 = arith.constant 0 : index
    %176 = vector.load %arg13[%c0_47, %c0_48, %c0_49] : memref<2x8x32xf32, #tpu.memory_space<vmem>>, vector<2x8x32xf32>
    tpu.vector_store %arg13[%c0_47, %c0_48, %c0_49], %175 {strides = array<i32>} : memref<2x8x32xf32, #tpu.memory_space<vmem>>, vector<2x8x32xf32>,
    return
  }
  func.func @transform_0(%arg0: i32) -> (i32, i32, i32) {
    %c0_i32 = arith.constant 0 : i32
    %c0_i32_0 = arith.constant 0 : i32
    %c0_i32_1 = arith.constant 0 : i32
    return %arg0, %c0_i32, %c0_i32_0 : i32, i32, i32
  }
  func.func @transform_1(%arg0: i32) -> (i32, i32) {
    %c0_i32 = arith.constant 0 : i32
    %c0_i32_0 = arith.constant 0 : i32
    %c0_i32_1 = arith.constant 0 : i32
    return %c0_i32, %c0_i32_0 : i32, i32
  }
  func.func @transform_2(%arg0: i32) -> (i32, i32) {
    %c0_i32 = arith.constant 0 : i32
    %c0_i32_0 = arith.constant 0 : i32
    %c0_i32_1 = arith.constant 0 : i32
    return %c0_i32, %c0_i32_0 : i32, i32
  }
  func.func @transform_3(%arg0: i32) -> (i32, i32) {
    %c0_i32 = arith.constant 0 : i32
    %c0_i32_0 = arith.constant 0 : i32
    %c0_i32_1 = arith.constant 0 : i32
    return %c0_i32, %c0_i32_0 : i32, i32
  }
  func.func @transform_4(%arg0: i32) -> (i32, i32, i32) {
    %c0_i32 = arith.constant 0 : i32
    %c0_i32_0 = arith.constant 0 : i32
    %c0_i32_1 = arith.constant 0 : i32
    %c0_i32_2 = arith.constant 0 : i32
    return %c0_i32, %c0_i32_0, %c0_i32_1 : i32, i32, i32
  }
  func.func @transform_5(%arg0: i32) -> (i32, i32) {
    %c0_i32 = arith.constant 0 : i32
    %c0_i32_0 = arith.constant 0 : i32
    %c0_i32_1 = arith.constant 0 : i32
    return %c0_i32, %c0_i32_0 : i32, i32
  }
  func.func @transform_6(%arg0: i32) -> (i32, i32) {
    %c0_i32 = arith.constant 0 : i32
    %c0_i32_0 = arith.constant 0 : i32
    %c0_i32_1 = arith.constant 0 : i32
    return %c0_i32, %c0_i32_0 : i32, i32
  }
  func.func @transform_7(%arg0: i32) -> (i32, i32) {
    %c0_i32 = arith.constant 0 : i32
    %c0_i32_0 = arith.constant 0 : i32
    %c0_i32_1 = arith.constant 0 : i32
    return %c0_i32, %c0_i32_0 : i32, i32
  }
  func.func @transform_8(%arg0: i32) -> (i32, i32) {
    %c0_i32 = arith.constant 0 : i32
    %c0_i32_0 = arith.constant 0 : i32
    %c0_i32_1 = arith.constant 0 : i32
    return %c0_i32, %c0_i32_0 : i32, i32
  }
  func.func @transform_9(%arg0: i32) -> (i32, i32) {
    %c0_i32 = arith.constant 0 : i32
    %c0_i32_0 = arith.constant 0 : i32
    %c0_i32_1 = arith.constant 0 : i32
    return %c0_i32, %c0_i32_0 : i32, i32
  }
  func.func @transform_10(%arg0: i32) -> (i32, i32) {
    %c0_i32 = arith.constant 0 : i32
    %c0_i32_0 = arith.constant 0 : i32
    %c0_i32_1 = arith.constant 0 : i32
    return %c0_i32, %c0_i32_0 : i32, i32
  }
  func.func @transform_11(%arg0: i32) -> (i32, i32) {
    %c0_i32 = arith.constant 0 : i32
    %c0_i32_0 = arith.constant 0 : i32
    %c0_i32_1 = arith.constant 0 : i32
    return %c0_i32, %c0_i32_0 : i32, i32
  }
  func.func @transform_12(%arg0: i32) -> (i32, i32, i32) {
    %c0_i32 = arith.constant 0 : i32
    %c0_i32_0 = arith.constant 0 : i32
    %c0_i32_1 = arith.constant 0 : i32
    return %arg0, %c0_i32, %c0_i32_0 : i32, i32, i32
  }
}

module attributes {stable_mosaic.version = 11 : i64} {
  func.func @layer_kernel(%arg0: i32, %arg1: memref<2x8x32xf32, #tpu.memory_space<vmem>>, %arg2: memref<1x32xf32, #tpu.memory_space<vmem>>, %arg3: memref<1x32xf32, #tpu.memory_space<vmem>>, %arg4: memref<32x96xbf16, #tpu.memory_space<vmem>>, %arg5: memref<4x8x32xbf16, #tpu.memory_space<vmem>>, %arg6: memref<1x32xf32, #tpu.memory_space<vmem>>, %arg7: memref<1x32xf32, #tpu.memory_space<vmem>>, %arg8: memref<1x32xf32, #tpu.memory_space<vmem>>, %arg9: memref<32x64xbf16, #tpu.memory_space<vmem>>, %arg10: memref<1x64xf32, #tpu.memory_space<vmem>>, %arg11: memref<64x32xbf16, #tpu.memory_space<vmem>>, %arg12: memref<1x32xf32, #tpu.memory_space<vmem>>, %arg13: memref<2x8x32xf32, #tpu.memory_space<vmem>>) attributes {dimension_semantics = [#tpu.dimension_semantics<parallel>], iteration_bounds = array<i64: 1>, scalar_prefetch = 0 : i64, scratch_operands = 0 : i64, tpu.core_type = #tpu.core_type<tc>, window_params = [{transform_indices = @transform_0, window_bounds = array<i64: 2, 8, 32>}, {pipeline_mode = #tpu.pipeline_mode<synchronous>, transform_indices = @transform_1, window_bounds = array<i64: 1, 32>}, {pipeline_mode = #tpu.pipeline_mode<synchronous>, transform_indices = @transform_2, window_bounds = array<i64: 1, 32>}, {pipeline_mode = #tpu.pipeline_mode<synchronous>, transform_indices = @transform_3, window_bounds = array<i64: 32, 96>}, {pipeline_mode = #tpu.pipeline_mode<synchronous>, transform_indices = @transform_4, window_bounds = array<i64: 4, 8, 32>}, {pipeline_mode = #tpu.pipeline_mode<synchronous>, transform_indices = @transform_5, window_bounds = array<i64: 1, 32>}, {pipeline_mode = #tpu.pipeline_mode<synchronous>, transform_indices = @transform_6, window_bounds = array<i64: 1, 32>}, {pipeline_mode = #tpu.pipeline_mode<synchronous>, transform_indices = @transform_7, window_bounds = array<i64: 1, 32>}, {pipeline_mode = #tpu.pipeline_mode<synchronous>, transform_indices = @transform_8, window_bounds = array<i64: 32, 64>}, {pipeline_mode = #tpu.pipeline_mode<synchronous>, transform_indices = @transform_9, window_bounds = array<i64: 1, 64>}, {pipeline_mode = #tpu.pipeline_mode<synchronous>, transform_indices = @transform_10, window_bounds = array<i64: 64, 32>}, {pipeline_mode = #tpu.pipeline_mode<synchronous>, transform_indices = @transform_11, window_bounds = array<i64: 1, 32>}, {transform_indices = @transform_12, window_bounds = array<i64: 2, 8, 32>}]} {
    %c0 = arith.constant 0 : index
    %c0_0 = arith.constant 0 : index
    %c0_1 = arith.constant 0 : index
    %0 = vector.load %arg1[%c0, %c0_0, %c0_1] : memref<2x8x32xf32, #tpu.memory_space<vmem>>, vector<2x8x32xf32>
    %1 = vector.shape_cast %0 : vector<2x8x32xf32> to vector<16x32xf32>
    %c0_2 = arith.constant 0 : index
    %c0_3 = arith.constant 0 : index
    %2 = vector.load %arg2[%c0_2, %c0_3] : memref<1x32xf32, #tpu.memory_space<vmem>>, vector<1x32xf32>
    %3 = vector.shape_cast %2 : vector<1x32xf32> to vector<32xf32>
    %c0_4 = arith.constant 0 : index
    %c0_5 = arith.constant 0 : index
    %4 = vector.load %arg3[%c0_4, %c0_5] : memref<1x32xf32, #tpu.memory_space<vmem>>, vector<1x32xf32>
    %5 = vector.shape_cast %4 : vector<1x32xf32> to vector<32xf32>
    %cst = arith.constant dense<0.000000e+00> : vector<16xf32>
    %6 = vector.multi_reduction <add>, %1, %cst [1] : vector<16x32xf32> to vector<16xf32>
    %7 = vector.shape_cast %6 : vector<16xf32> to vector<16x1xf32>
    %cst_6 = arith.constant 3.200000e+01 : f32
    %8 = vector.broadcast %cst_6 : f32 to vector<16x1xf32>
    %9 = arith.divf %7, %8 : vector<16x1xf32>
    %10 = vector.broadcast %9 : vector<16x1xf32> to vector<16x32xf32>
    %11 = arith.subf %1, %10 : vector<16x32xf32>
    %12 = vector.broadcast %9 : vector<16x1xf32> to vector<16x32xf32>
    %13 = arith.subf %1, %12 : vector<16x32xf32>
    %14 = arith.mulf %11, %13 : vector<16x32xf32>
    %cst_7 = arith.constant dense<0.000000e+00> : vector<16xf32>
    %15 = vector.multi_reduction <add>, %14, %cst_7 [1] : vector<16x32xf32> to vector<16xf32>
    %16 = vector.shape_cast %15 : vector<16xf32> to vector<16x1xf32>
    %cst_8 = arith.constant 3.200000e+01 : f32
    %17 = vector.broadcast %cst_8 : f32 to vector<16x1xf32>
    %18 = arith.divf %16, %17 : vector<16x1xf32>
    %19 = vector.broadcast %9 : vector<16x1xf32> to vector<16x32xf32>
    %20 = arith.subf %1, %19 : vector<16x32xf32>
    %cst_9 = arith.constant 9.99999974E-6 : f32
    %21 = vector.broadcast %cst_9 : f32 to vector<16x1xf32>
    %22 = arith.addf %18, %21 : vector<16x1xf32>
    %23 = math.rsqrt %22 : vector<16x1xf32>
    %24 = vector.broadcast %23 : vector<16x1xf32> to vector<16x32xf32>
    %25 = arith.mulf %20, %24 : vector<16x32xf32>
    %26 = vector.shape_cast %3 : vector<32xf32> to vector<1x32xf32>
    %27 = vector.broadcast %26 : vector<1x32xf32> to vector<16x32xf32>
    %28 = arith.mulf %25, %27 : vector<16x32xf32>
    %29 = vector.shape_cast %5 : vector<32xf32> to vector<1x32xf32>
    %30 = vector.broadcast %29 : vector<1x32xf32> to vector<16x32xf32>
    %31 = arith.addf %28, %30 : vector<16x32xf32>
    %32 = arith.truncf %31 : vector<16x32xf32> to vector<16x32xbf16>
    %c0_10 = arith.constant 0 : index
    %c0_11 = arith.constant 0 : index
    %33 = vector.load %arg4[%c0_10, %c0_11] : memref<32x96xbf16, #tpu.memory_space<vmem>>, vector<32x96xbf16>
    %cst_12 = arith.constant dense<0.000000e+00> : vector<16x96xf32>
    %34 = tpu.matmul %32, %33, %cst_12 {dimension_numbers = #tpu.dot_dimension_numbers<[1], [0], [0], [1], [0, 0, 1, 1], [], []>} : vector<16x32xbf16>, vector<32x96xbf16>, vector<16x96xf32> -> vector<16x96xf32>
    %35 = vector.extract_strided_slice %34 {offsets = [0, 0], sizes = [8, 8], strides = [1, 1]} : vector<16x96xf32> to vector<8x8xf32>
    %36 = vector.extract_strided_slice %34 {offsets = [8, 0], sizes = [8, 8], strides = [1, 1]} : vector<16x96xf32> to vector<8x8xf32>
    %37 = vector.extract_strided_slice %34 {offsets = [0, 8], sizes = [8, 8], strides = [1, 1]} : vector<16x96xf32> to vector<8x8xf32>
    %38 = vector.extract_strided_slice %34 {offsets = [8, 8], sizes = [8, 8], strides = [1, 1]} : vector<16x96xf32> to vector<8x8xf32>
    %39 = vector.extract_strided_slice %34 {offsets = [0, 16], sizes = [8, 8], strides = [1, 1]} : vector<16x96xf32> to vector<8x8xf32>
    %40 = vector.extract_strided_slice %34 {offsets = [8, 16], sizes = [8, 8], strides = [1, 1]} : vector<16x96xf32> to vector<8x8xf32>
    %41 = vector.extract_strided_slice %34 {offsets = [0, 24], sizes = [8, 8], strides = [1, 1]} : vector<16x96xf32> to vector<8x8xf32>
    %42 = vector.extract_strided_slice %34 {offsets = [8, 24], sizes = [8, 8], strides = [1, 1]} : vector<16x96xf32> to vector<8x8xf32>
    %43 = vector.shape_cast %35 : vector<8x8xf32> to vector<1x8x8xf32>
    %44 = vector.shape_cast %36 : vector<8x8xf32> to vector<1x8x8xf32>
    %45 = vector.shape_cast %37 : vector<8x8xf32> to vector<1x8x8xf32>
    %46 = vector.shape_cast %38 : vector<8x8xf32> to vector<1x8x8xf32>
    %47 = vector.shape_cast %39 : vector<8x8xf32> to vector<1x8x8xf32>
    %48 = vector.shape_cast %40 : vector<8x8xf32> to vector<1x8x8xf32>
    %49 = vector.shape_cast %41 : vector<8x8xf32> to vector<1x8x8xf32>
    %50 = vector.shape_cast %42 : vector<8x8xf32> to vector<1x8x8xf32>
    %51 = tpu.concatenate %43, %44, %45, %46, %47, %48, %49, %50 in 0 : vector<1x8x8xf32>, vector<1x8x8xf32>, vector<1x8x8xf32>, vector<1x8x8xf32>, vector<1x8x8xf32>, vector<1x8x8xf32>, vector<1x8x8xf32>, vector<1x8x8xf32> -> vector<8x8x8xf32>
    %52 = arith.truncf %51 : vector<8x8x8xf32> to vector<8x8x8xbf16>
    %53 = vector.extract_strided_slice %34 {offsets = [0, 32], sizes = [8, 8], strides = [1, 1]} : vector<16x96xf32> to vector<8x8xf32>
    %54 = vector.extract_strided_slice %34 {offsets = [8, 32], sizes = [8, 8], strides = [1, 1]} : vector<16x96xf32> to vector<8x8xf32>
    %55 = vector.extract_strided_slice %34 {offsets = [0, 40], sizes = [8, 8], strides = [1, 1]} : vector<16x96xf32> to vector<8x8xf32>
    %56 = vector.extract_strided_slice %34 {offsets = [8, 40], sizes = [8, 8], strides = [1, 1]} : vector<16x96xf32> to vector<8x8xf32>
    %57 = vector.extract_strided_slice %34 {offsets = [0, 48], sizes = [8, 8], strides = [1, 1]} : vector<16x96xf32> to vector<8x8xf32>
    %58 = vector.extract_strided_slice %34 {offsets = [8, 48], sizes = [8, 8], strides = [1, 1]} : vector<16x96xf32> to vector<8x8xf32>
    %59 = vector.extract_strided_slice %34 {offsets = [0, 56], sizes = [8, 8], strides = [1, 1]} : vector<16x96xf32> to vector<8x8xf32>
    %60 = vector.extract_strided_slice %34 {offsets = [8, 56], sizes = [8, 8], strides = [1, 1]} : vector<16x96xf32> to vector<8x8xf32>
    %61 = vector.shape_cast %53 : vector<8x8xf32> to vector<1x8x8xf32>
    %62 = vector.shape_cast %54 : vector<8x8xf32> to vector<1x8x8xf32>
    %63 = vector.shape_cast %55 : vector<8x8xf32> to vector<1x8x8xf32>
    %64 = vector.shape_cast %56 : vector<8x8xf32> to vector<1x8x8xf32>
    %65 = vector.shape_cast %57 : vector<8x8xf32> to vector<1x8x8xf32>
    %66 = vector.shape_cast %58 : vector<8x8xf32> to vector<1x8x8xf32>
    %67 = vector.shape_cast %59 : vector<8x8xf32> to vector<1x8x8xf32>
    %68 = vector.shape_cast %60 : vector<8x8xf32> to vector<1x8x8xf32>
    %69 = tpu.concatenate %61, %62, %63, %64, %65, %66, %67, %68 in 0 : vector<1x8x8xf32>, vector<1x8x8xf32>, vector<1x8x8xf32>, vector<1x8x8xf32>, vector<1x8x8xf32>, vector<1x8x8xf32>, vector<1x8x8xf32>, vector<1x8x8xf32> -> vector<8x8x8xf32>
    %70 = arith.truncf %69 : vector<8x8x8xf32> to vector<8x8x8xbf16>
    %71 = vector.extract_strided_slice %34 {offsets = [0, 64], sizes = [8, 8], strides = [1, 1]} : vector<16x96xf32> to vector<8x8xf32>
    %72 = vector.extract_strided_slice %34 {offsets = [8, 64], sizes = [8, 8], strides = [1, 1]} : vector<16x96xf32> to vector<8x8xf32>
    %73 = vector.extract_strided_slice %34 {offsets = [0, 72], sizes = [8, 8], strides = [1, 1]} : vector<16x96xf32> to vector<8x8xf32>
    %74 = vector.extract_strided_slice %34 {offsets = [8, 72], sizes = [8, 8], strides = [1, 1]} : vector<16x96xf32> to vector<8x8xf32>
    %75 = vector.extract_strided_slice %34 {offsets = [0, 80], sizes = [8, 8], strides = [1, 1]} : vector<16x96xf32> to vector<8x8xf32>
    %76 = vector.extract_strided_slice %34 {offsets = [8, 80], sizes = [8, 8], strides = [1, 1]} : vector<16x96xf32> to vector<8x8xf32>
    %77 = vector.extract_strided_slice %34 {offsets = [0, 88], sizes = [8, 8], strides = [1, 1]} : vector<16x96xf32> to vector<8x8xf32>
    %78 = vector.extract_strided_slice %34 {offsets = [8, 88], sizes = [8, 8], strides = [1, 1]} : vector<16x96xf32> to vector<8x8xf32>
    %79 = vector.shape_cast %71 : vector<8x8xf32> to vector<1x8x8xf32>
    %80 = vector.shape_cast %72 : vector<8x8xf32> to vector<1x8x8xf32>
    %81 = vector.shape_cast %73 : vector<8x8xf32> to vector<1x8x8xf32>
    %82 = vector.shape_cast %74 : vector<8x8xf32> to vector<1x8x8xf32>
    %83 = vector.shape_cast %75 : vector<8x8xf32> to vector<1x8x8xf32>
    %84 = vector.shape_cast %76 : vector<8x8xf32> to vector<1x8x8xf32>
    %85 = vector.shape_cast %77 : vector<8x8xf32> to vector<1x8x8xf32>
    %86 = vector.shape_cast %78 : vector<8x8xf32> to vector<1x8x8xf32>
    %87 = tpu.concatenate %79, %80, %81, %82, %83, %84, %85, %86 in 0 : vector<1x8x8xf32>, vector<1x8x8xf32>, vector<1x8x8xf32>, vector<1x8x8xf32>, vector<1x8x8xf32>, vector<1x8x8xf32>, vector<1x8x8xf32>, vector<1x8x8xf32> -> vector<8x8x8xf32>
    %88 = arith.truncf %87 : vector<8x8x8xf32> to vector<8x8x8xbf16>
    "tpu.trace_start"() <{level = 10 : i32, message = "bqd,bkd->bqk"}> : () -> ()
    %cst_13 = arith.constant dense<0.000000e+00> : vector<8x8x8xf32>
    %89 = tpu.matmul %52, %70, %cst_13 {dimension_numbers = #tpu.dot_dimension_numbers<[2], [2], [1], [1], [0, 0, 0, 1, 1, 1], [0], [0]>} : vector<8x8x8xbf16>, vector<8x8x8xbf16>, vector<8x8x8xf32> -> vector<8x8x8xf32>
    "tpu.trace_stop"() : () -> ()
    %cst_14 = arith.constant 0.176776692 : f32
    %90 = vector.broadcast %cst_14 : f32 to vector<8x8x8xf32>
    %91 = arith.mulf %89, %90 : vector<8x8x8xf32>
    %cst_15 = arith.constant dense<0xFF800000> : vector<8x8xf32>
    %92 = vector.multi_reduction <maximumf>, %91, %cst_15 [2] : vector<8x8x8xf32> to vector<8x8xf32>
    %93 = vector.shape_cast %92 : vector<8x8xf32> to vector<8x8x1xf32>
    %94 = vector.broadcast %93 : vector<8x8x1xf32> to vector<8x8x8xf32>
    %95 = arith.subf %91, %94 : vector<8x8x8xf32>
    %96 = math.exp %95 : vector<8x8x8xf32>
    %cst_16 = arith.constant dense<0.000000e+00> : vector<8x8xf32>
    %97 = vector.multi_reduction <add>, %96, %cst_16 [2] : vector<8x8x8xf32> to vector<8x8xf32>
    %98 = vector.shape_cast %97 : vector<8x8xf32> to vector<8x8x1xf32>
    %99 = tpu.reciprocal %98 {approx = true} : vector<8x8x1xf32> -> vector<8x8x1xf32>
    %100 = vector.broadcast %99 : vector<8x8x1xf32> to vector<8x8x8xf32>
    %101 = arith.mulf %96, %100 : vector<8x8x8xf32>
    %102 = arith.truncf %101 : vector<8x8x8xf32> to vector<8x8x8xbf16>
    "tpu.trace_start"() <{level = 10 : i32, message = "bqk,bkd->bqd"}> : () -> ()
    %cst_17 = arith.constant dense<0.000000e+00> : vector<8x8x8xf32>
    %103 = tpu.matmul %102, %88, %cst_17 {dimension_numbers = #tpu.dot_dimension_numbers<[2], [1], [1], [2], [0, 0, 0, 1, 1, 2], [0], [0]>} : vector<8x8x8xbf16>, vector<8x8x8xbf16>, vector<8x8x8xf32> -> vector<8x8x8xf32>
    "tpu.trace_stop"() : () -> ()
    %c0_18 = arith.constant 0 : index
    %c0_19 = arith.constant 0 : index
    %c0_20 = arith.constant 0 : index
    %104 = vector.load %arg5[%c0_18, %c0_19, %c0_20] : memref<4x8x32xbf16, #tpu.memory_space<vmem>>, vector<4x8x32xbf16>
    %105 = vector.shape_cast %104 : vector<4x8x32xbf16> to vector<4x1x8x32xbf16>
    %106 = vector.shape_cast %105 : vector<4x1x8x32xbf16> to vector<4x1x8x32xbf16>
    %107 = vector.broadcast %106 : vector<4x1x8x32xbf16> to vector<4x2x8x32xbf16>
    %108 = vector.shape_cast %107 : vector<4x2x8x32xbf16> to vector<8x8x32xbf16>
    %109 = arith.truncf %103 : vector<8x8x8xf32> to vector<8x8x8xbf16>
    "tpu.trace_start"() <{level = 10 : i32, message = "bnd,bdk->bnk"}> : () -> ()
    %cst_21 = arith.constant dense<0.000000e+00> : vector<8x8x32xf32>
    %110 = tpu.matmul %109, %108, %cst_21 {dimension_numbers = #tpu.dot_dimension_numbers<[2], [1], [1], [2], [0, 0, 0, 1, 1, 2], [0], [0]>} : vector<8x8x8xbf16>, vector<8x8x32xbf16>, vector<8x8x32xf32> -> vector<8x8x32xf32>
    "tpu.trace_stop"() : () -> ()
    %111 = vector.shape_cast %110 : vector<8x8x32xf32> to vector<4x2x8x32xf32>
    %cst_22 = arith.constant dense<0.000000e+00> : vector<2x8x32xf32>
    %112 = vector.multi_reduction <add>, %111, %cst_22 [0] : vector<4x2x8x32xf32> to vector<2x8x32xf32>
    %c0_23 = arith.constant 0 : index
    %c0_24 = arith.constant 0 : index
    %113 = vector.load %arg6[%c0_23, %c0_24] : memref<1x32xf32, #tpu.memory_space<vmem>>, vector<1x32xf32>
    %114 = vector.shape_cast %113 : vector<1x32xf32> to vector<32xf32>
    %115 = vector.shape_cast %114 : vector<32xf32> to vector<1x1x32xf32>
    %116 = vector.broadcast %115 : vector<1x1x32xf32> to vector<2x8x32xf32>
    %117 = arith.addf %112, %116 : vector<2x8x32xf32>
    %118 = vector.shape_cast %117 : vector<2x8x32xf32> to vector<16x32xf32>
    %119 = arith.addf %1, %118 : vector<16x32xf32>
    %c0_25 = arith.constant 0 : index
    %c0_26 = arith.constant 0 : index
    %120 = vector.load %arg7[%c0_25, %c0_26] : memref<1x32xf32, #tpu.memory_space<vmem>>, vector<1x32xf32>
    %121 = vector.shape_cast %120 : vector<1x32xf32> to vector<32xf32>
    %c0_27 = arith.constant 0 : index
    %c0_28 = arith.constant 0 : index
    %122 = vector.load %arg8[%c0_27, %c0_28] : memref<1x32xf32, #tpu.memory_space<vmem>>, vector<1x32xf32>
    %123 = vector.shape_cast %122 : vector<1x32xf32> to vector<32xf32>
    %cst_29 = arith.constant dense<0.000000e+00> : vector<16xf32>
    %124 = vector.multi_reduction <add>, %119, %cst_29 [1] : vector<16x32xf32> to vector<16xf32>
    %125 = vector.shape_cast %124 : vector<16xf32> to vector<16x1xf32>
    %cst_30 = arith.constant 3.200000e+01 : f32
    %126 = vector.broadcast %cst_30 : f32 to vector<16x1xf32>
    %127 = arith.divf %125, %126 : vector<16x1xf32>
    %128 = vector.broadcast %127 : vector<16x1xf32> to vector<16x32xf32>
    %129 = arith.subf %119, %128 : vector<16x32xf32>
    %130 = vector.broadcast %127 : vector<16x1xf32> to vector<16x32xf32>
    %131 = arith.subf %119, %130 : vector<16x32xf32>
    %132 = arith.mulf %129, %131 : vector<16x32xf32>
    %cst_31 = arith.constant dense<0.000000e+00> : vector<16xf32>
    %133 = vector.multi_reduction <add>, %132, %cst_31 [1] : vector<16x32xf32> to vector<16xf32>
    %134 = vector.shape_cast %133 : vector<16xf32> to vector<16x1xf32>
    %cst_32 = arith.constant 3.200000e+01 : f32
    %135 = vector.broadcast %cst_32 : f32 to vector<16x1xf32>
    %136 = arith.divf %134, %135 : vector<16x1xf32>
    %137 = vector.broadcast %127 : vector<16x1xf32> to vector<16x32xf32>
    %138 = arith.subf %119, %137 : vector<16x32xf32>
    %cst_33 = arith.constant 9.99999974E-6 : f32
    %139 = vector.broadcast %cst_33 : f32 to vector<16x1xf32>
    %140 = arith.addf %136, %139 : vector<16x1xf32>
    %141 = math.rsqrt %140 : vector<16x1xf32>
    %142 = vector.broadcast %141 : vector<16x1xf32> to vector<16x32xf32>
    %143 = arith.mulf %138, %142 : vector<16x32xf32>
    %144 = vector.shape_cast %121 : vector<32xf32> to vector<1x32xf32>
    %145 = vector.broadcast %144 : vector<1x32xf32> to vector<16x32xf32>
    %146 = arith.mulf %143, %145 : vector<16x32xf32>
    %147 = vector.shape_cast %123 : vector<32xf32> to vector<1x32xf32>
    %148 = vector.broadcast %147 : vector<1x32xf32> to vector<16x32xf32>
    %149 = arith.addf %146, %148 : vector<16x32xf32>
    %150 = arith.truncf %149 : vector<16x32xf32> to vector<16x32xbf16>
    %c0_34 = arith.constant 0 : index
    %c0_35 = arith.constant 0 : index
    %151 = vector.load %arg9[%c0_34, %c0_35] : memref<32x64xbf16, #tpu.memory_space<vmem>>, vector<32x64xbf16>
    %cst_36 = arith.constant dense<0.000000e+00> : vector<16x64xf32>
    %152 = tpu.matmul %150, %151, %cst_36 {dimension_numbers = #tpu.dot_dimension_numbers<[1], [0], [0], [1], [0, 0, 1, 1], [], []>} : vector<16x32xbf16>, vector<32x64xbf16>, vector<16x64xf32> -> vector<16x64xf32>
    %c0_37 = arith.constant 0 : index
    %c0_38 = arith.constant 0 : index
    %153 = vector.load %arg10[%c0_37, %c0_38] : memref<1x64xf32, #tpu.memory_space<vmem>>, vector<1x64xf32>
    %154 = vector.shape_cast %153 : vector<1x64xf32> to vector<64xf32>
    %155 = vector.shape_cast %154 : vector<64xf32> to vector<1x64xf32>
    %156 = vector.broadcast %155 : vector<1x64xf32> to vector<16x64xf32>
    %157 = arith.addf %152, %156 : vector<16x64xf32>
    %cst_39 = arith.constant 5.000000e-01 : f32
    %158 = vector.broadcast %cst_39 : f32 to vector<16x64xf32>
    %159 = arith.mulf %158, %157 : vector<16x64xf32>
    %cst_40 = arith.constant 0.707106769 : f32
    %160 = vector.broadcast %cst_40 : f32 to vector<16x64xf32>
    %161 = arith.mulf %157, %160 : vector<16x64xf32>
    %162 = math.erf %161 : vector<16x64xf32>
    %cst_41 = arith.constant 1.000000e+00 : f32
    %163 = vector.broadcast %cst_41 : f32 to vector<16x64xf32>
    %164 = arith.addf %163, %162 : vector<16x64xf32>
    %165 = arith.mulf %159, %164 : vector<16x64xf32>
    %166 = arith.truncf %165 : vector<16x64xf32> to vector<16x64xbf16>
    %c0_42 = arith.constant 0 : index
    %c0_43 = arith.constant 0 : index
    %167 = vector.load %arg11[%c0_42, %c0_43] : memref<64x32xbf16, #tpu.memory_space<vmem>>, vector<64x32xbf16>
    %cst_44 = arith.constant dense<0.000000e+00> : vector<16x32xf32>
    %168 = tpu.matmul %166, %167, %cst_44 {dimension_numbers = #tpu.dot_dimension_numbers<[1], [0], [0], [1], [0, 0, 1, 1], [], []>} : vector<16x64xbf16>, vector<64x32xbf16>, vector<16x32xf32> -> vector<16x32xf32>
    %c0_45 = arith.constant 0 : index
    %c0_46 = arith.constant 0 : index
    %169 = vector.load %arg12[%c0_45, %c0_46] : memref<1x32xf32, #tpu.memory_space<vmem>>, vector<1x32xf32>
    %170 = vector.shape_cast %169 : vector<1x32xf32> to vector<32xf32>
    %171 = vector.shape_cast %170 : vector<32xf32> to vector<1x32xf32>
    %172 = vector.broadcast %171 : vector<1x32xf32> to vector<16x32xf32>
    %173 = arith.addf %168, %172 : vector<16x32xf32>
    %174 = arith.addf %119, %173 : vector<16x32xf32>
    %175 = vector.shape_cast %174 : vector<16x32xf32> to vector<2x8x32xf32>
    %c0_47 = arith.constant 0 : index
    %c0_48 = arith.constant 0 : index
    %c0_49 = arith.constant 0 : index
    %176 = vector.load %arg13[%c0_47, %c0_48, %c0_49] : memref<2x8x32xf32, #tpu.memory_space<vmem>>, vector<2x8x32xf32>
    tpu.vector_store %arg13[%c0_47, %c0_48, %c0_49], %175 {strides = array<i32>} : memref<2x8x32xf32, #tpu.memory_space<vmem>>, vector<2x8x32xf32>,
    return
  }
  func.func @transform_0(%arg0: i32) -> (i32, i32, i32) {
    %c0_i32 = arith.constant 0 : i32
    %c0_i32_0 = arith.constant 0 : i32
    %c0_i32_1 = arith.constant 0 : i32
    return %arg0, %c0_i32, %c0_i32_0 : i32, i32, i32
  }
  func.func @transform_1(%arg0: i32) -> (i32, i32) {
    %c0_i32 = arith.constant 0 : i32
    %c0_i32_0 = arith.constant 0 : i32
    %c0_i32_1 = arith.constant 0 : i32
    return %c0_i32, %c0_i32_0 : i32, i32
  }
  func.func @transform_2(%arg0: i32) -> (i32, i32) {
    %c0_i32 = arith.constant 0 : i32
    %c0_i32_0 = arith.constant 0 : i32
    %c0_i32_1 = arith.constant 0 : i32
    return %c0_i32, %c0_i32_0 : i32, i32
  }
  func.func @transform_3(%arg0: i32) -> (i32, i32) {
    %c0_i32 = arith.constant 0 : i32
    %c0_i32_0 = arith.constant 0 : i32
    %c0_i32_1 = arith.constant 0 : i32
    return %c0_i32, %c0_i32_0 : i32, i32
  }
  func.func @transform_4(%arg0: i32) -> (i32, i32, i32) {
    %c0_i32 = arith.constant 0 : i32
    %c0_i32_0 = arith.constant 0 : i32
    %c0_i32_1 = arith.constant 0 : i32
    %c0_i32_2 = arith.constant 0 : i32
    return %c0_i32, %c0_i32_0, %c0_i32_1 : i32, i32, i32
  }
  func.func @transform_5(%arg0: i32) -> (i32, i32) {
    %c0_i32 = arith.constant 0 : i32
    %c0_i32_0 = arith.constant 0 : i32
    %c0_i32_1 = arith.constant 0 : i32
    return %c0_i32, %c0_i32_0 : i32, i32
  }
  func.func @transform_6(%arg0: i32) -> (i32, i32) {
    %c0_i32 = arith.constant 0 : i32
    %c0_i32_0 = arith.constant 0 : i32
    %c0_i32_1 = arith.constant 0 : i32
    return %c0_i32, %c0_i32_0 : i32, i32
  }
  func.func @transform_7(%arg0: i32) -> (i32, i32) {
    %c0_i32 = arith.constant 0 : i32
    %c0_i32_0 = arith.constant 0 : i32
    %c0_i32_1 = arith.constant 0 : i32
    return %c0_i32, %c0_i32_0 : i32, i32
  }
  func.func @transform_8(%arg0: i32) -> (i32, i32) {
    %c0_i32 = arith.constant 0 : i32
    %c0_i32_0 = arith.constant 0 : i32
    %c0_i32_1 = arith.constant 0 : i32
    return %c0_i32, %c0_i32_0 : i32, i32
  }
  func.func @transform_9(%arg0: i32) -> (i32, i32) {
    %c0_i32 = arith.constant 0 : i32
    %c0_i32_0 = arith.constant 0 : i32
    %c0_i32_1 = arith.constant 0 : i32
    return %c0_i32, %c0_i32_0 : i32, i32
  }
  func.func @transform_10(%arg0: i32) -> (i32, i32) {
    %c0_i32 = arith.constant 0 : i32
    %c0_i32_0 = arith.constant 0 : i32
    %c0_i32_1 = arith.constant 0 : i32
    return %c0_i32, %c0_i32_0 : i32, i32
  }
  func.func @transform_11(%arg0: i32) -> (i32, i32) {
    %c0_i32 = arith.constant 0 : i32
    %c0_i32_0 = arith.constant 0 : i32
    %c0_i32_1 = arith.constant 0 : i32
    return %c0_i32, %c0_i32_0 : i32, i32
  }
  func.func @transform_12(%arg0: i32) -> (i32, i32, i32) {
    %c0_i32 = arith.constant 0 : i32
    %c0_i32_0 = arith.constant 0 : i32
    %c0_i32_1 = arith.constant 0 : i32
    return %arg0, %c0_i32, %c0_i32_0 : i32, i32, i32
  }
}

</mosaic_0001>

<bundles_post_ra>
// kernel: transformer_forward.3
= control target key start
LH: loop header
LB: loop body
LE: loop exit
PB: predicated region body
PF: predicated region fallthrough
CT: control target
= control target key end

     0   :  { %17 = vsyncpa [#allocation3], 0  ;;  %s2510_s0 = inlined_call_operand.hbm [shape: f32[2,8,32], index: 0, kind: input, shape index: {}, may-alias: {0,12}]   ;;  %s2511_s1 = inlined_call_operand.vmem [shape: f32[1,32], index: 1, kind: input, shape index: {}]   ;;  %s2512_s2 = inlined_call_operand.vmem [shape: f32[1,32], index: 2, kind: input, shape index: {}]   ;;  %s2513_s3 = inlined_call_operand.vmem [shape: bf16[32,96], index: 3, kind: input, shape index: {}]   ;;  %s2514_s4 = inlined_call_operand.vmem [shape: bf16[4,8,32], index: 4, kind: input, shape index: {}]   ;;  %s2515_s5 = inlined_call_operand.vmem [shape: f32[1,32], index: 5, kind: input, shape index: {}]   ;;  %s2516_s6 = inlined_call_operand.vmem [shape: f32[1,32], index: 6, kind: input, shape index: {}]   ;;  %s2517_s7 = inlined_call_operand.vmem [shape: f32[1,32], index: 7, kind: input, shape index: {}]   ;;  %s2518_s8 = inlined_call_operand.vmem [shape: bf16[32,64], index: 8, kind: input, shape index: {}]   ;;  %s2519_s9 = inlined_call_operand.vmem [shape: f32[1,64], index: 9, kind: input, shape index: {}]   ;;  %s2520_s10 = inlined_call_operand.vmem [shape: bf16[64,32], index: 10, kind: input, shape index: {}]   ;;  %s2521_s11 = inlined_call_operand.vmem [shape: f32[1,32], index: 11, kind: input, shape index: {}]   ;;  %s2522_s12 = inlined_call_operand.hbm [shape: f32[2,8,32], index: 12, kind: output, shape index: {}, may-alias: {0,12}]  }
   0x1   :  { %18 = vsyncpa [#allocation4], 0  ;;  %s2092_s21 = smov [#allocation2]  }
   0x2   :  { %s24_s22 = sshll.u32 %s2092_s21, 4  ;;  %s25_s22 = int_to_ptr.vmem [resolvable:$true] %s24_s22 }
   0x3   :  { %s2056_s23 = scalar_lea.vmem %s25_s22, 256  ;;  %p2061_p1 = scmp.lt.s32.totalorder %s25_s22, %s25_s22 }
   0x4   :  { %p2057_p0 = scmp.ne.s32.totalorder %s25_s22, %s2056_s23  ;;  %p2062_p2 = scmp.lt.s32.totalorder %s2056_s23, %s2056_s23 }
   0x6   :  { %p2063_p3 = por %p2062_p2, %p2061_p1 }
   0x8   :  { %p2064_p4 = pnand %p2063_p3, %p2057_p0 }
   0xa   :  { %2067 = shalt.err (!%p2064_p4)
}
   0xb   :  { %s2093_s24 = smov 128   ;;  %s2094_s25 = smov 8  }
   0xc   :  { %30 = dma.hbm_to_vmem [thread:$0]  %s2510_s0, 256, %s25_s22, [#allocation3], %s2093_s24, %s2093_s24, %s2094_s25  }
   0xd   :  { %2088 = dma.done.wait [#allocation3], 256  }
   0xe   :  { %2089 = vsyncadd [#allocation3], 4294967040  ;;  %vm61_vm0 = vcmask 261120   ;;  %v2174_v0 = vld [vmem:[#allocation2] sm:$0xff]  ;;  %v2176_v1 = vld [vmem:[#allocation2 + $0x8] sm:$0xff]  ;;  %v2095_v15 = vmov 0.0  }
   0xf   :  { %v62_v2 = vsel %vm61_vm0, %v2174_v0, 0.0  ;;  %v65_v3 = vsel %vm61_vm0, %v2176_v1, 0.0  ;;  %v1996_v14 = vld [vmem:[%s2513_s3 + $0x8] sm:$0xff]   ;;  %1798 = vmatprep.subr.bf16.mxu1 %v2095_v15  ;;  %vm2096_vm1 = vmmov 0   ;;  %v1997_v16 = vld [vmem:[%s2513_s3] sm:$0xff]   ;;  %1812 = vmatprep.subr.bf16.mxu0 %v2095_v15  ;;  %s2098_s16 = smov 120  }
  0x10   :  { %63 = vadd.xlane.f32.xlu0 %v62_v2  ;;  %1802 = vmatprep.mubr.msk.bf16.mxu1 %vm2096_vm1, %v2095_v15  ;;  %v1697_v25 = vld [vmem:[%s2511_s1] ss:$0 sm:$0xff]  ;;  %s2097_s1 = smov 112   ;;  %s2100_s17 = smov 96   ;;  %vm197_vm2 = vcmask 64512   ;;  %vm696_vm3 = vcmask 1043456  }
  0x11   :  { %1799 = vmatpush3.bf16.msra.mxu1 %v1996_v14  ;;  %1814 = vmatprep.mubr.msk.bf16.mxu0 %vm2096_vm1, %v2095_v15  ;;  %v1698_v29 = vld [vmem:[%s2512_s2] ss:$0 sm:$0xff]  ;;  %s2099_s2 = smov 104   ;;  %s2101_s18 = smov 64   ;;  %vm1631_vm4 = vcmask 523264  }
  0x12   :  { %1800 = vmatprep.subr.bf16.mxu1 %v2095_v15  ;;  %s2102_s22 = smov [#allocation5]  }
  0x13   :  { %s1685_s23 = sshll.u32 %s2102_s22, 4  ;;  %s1686_s23 = int_to_ptr.vmem [resolvable:$true] %s1685_s23 }
  0x14   :  { %66 = vadd.xlane.f32.xlu0 %v65_v3  ;;  %s2068_s26 = scalar_lea.vmem %s1686_s23, 256  ;;  %p2073_p6 = scmp.lt.s32.totalorder %s1686_s23, %s1686_s23 }
  0x15   :  { %1801 = vmatpush3.bf16.msra.mxu1 %v1997_v16  ;;  %p2069_p5 = scmp.ne.s32.totalorder %s1686_s23, %s2068_s26  ;;  %p2074_p7 = scmp.lt.s32.totalorder %s2068_s26, %s2068_s26 }
  0x16   :  { %1806 = vmatprep.subr.bf16.mxu1 %v2095_v15 }
  0x17   :  { %p2075_p8 = por %p2074_p7, %p2073_p6 }
  0x19   :  { %p2076_p9 = pnand %p2075_p8, %p2069_p5 }
  0x99   :  { %v64_v4 = vpop.xlane.xlu0 %63 }
  0x9a   :  { %v69_v5 = vmul.f32 0.03125, %v64_v4 }
  0x9c   :  { %v71_v6 = vsub.f32 %v2174_v0, %v69_v5 }
  0x9d   :  { %v67_v7 = vpop.xlane.xlu0 %66 }
  0x9e   :  { %v70_v8 = vmul.f32 0.03125, %v67_v7  ;;  %v73_v9 = vmul.f32 %v71_v6, %v71_v6 }
  0xa0   :  { %v72_v10 = vsub.f32 %v2176_v1, %v70_v8  ;;  %v75_v11 = vsel %vm61_vm0, %v73_v9, 0.0 }
  0xa1   :  { %76 = vadd.xlane.f32.xlu1 %v75_v11 }
  0xa2   :  { %v74_v12 = vmul.f32 %v72_v10, %v72_v10 }
  0xa4   :  { %v78_v13 = vsel %vm61_vm0, %v74_v12, 0.0 }
  0xa5   :  { %79 = vadd.xlane.f32.xlu1 %v78_v13 }
 0x12a   :  { %v77_v17 = vpop.xlane.xlu1 %76 }
 0x12b   :  { %v81_v18 = vmul.f32 0.03125, %v77_v17 }
 0x12d   :  { %v83_v19 = vadd.f32 1e-05, %v81_v18 }
 0x12e   :  { %v80_v20 = vpop.xlane.xlu1 %79 }
 0x12f   :  { %2004 = vrsqrt.f32 %v83_v19  ;;  %v82_v21 = vmul.f32 0.03125, %v80_v20 }
 0x131   :  { %v84_v22 = vadd.f32 1e-05, %v82_v21 }
 0x133   :  { %2006 = vrsqrt.f32 %v84_v22 }
 0x13c   :  { %v2005_v23 = vpop.eup %2004 }
 0x13d   :  { %v87_v24 = vmul.f32 %v2005_v23, %v71_v6 }
 0x13f   :  { %v95_v28 = vmul.f32 %v1697_v25, %v87_v24 }
 0x140   :  { %v2007_v26 = vpop.eup %2006 }
 0x141   :  { %v88_v27 = vmul.f32 %v2007_v26, %v72_v10  ;;  %v103_v31 = vadd.f32 %v1698_v29, %v95_v28 }
 0x143   :  { %v96_v30 = vmul.f32 %v1697_v25, %v88_v27 }
 0x145   :  { %v104_v32 = vadd.f32 %v1698_v29, %v96_v30 }
 0x147   :  { %v105_v33 = vpack.c.bf16 %v104_v32, %v103_v31 }
 0x149   :  { %1803 = vmatmul.mubr.msk.bf16.vlgmr.msra.gmra.mxu1 %vm61_vm0, %v105_v33 }
 0x14a   :  { %1808 = vmatprep.mubr.msk.bf16.mxu1 %vm2096_vm1, %v2095_v15 }
 0x209   :  { %v159_v34 = vpop.f32.mrf.mxu1 }
 0x20a   :  { %v186_v40 = vpack.c.bf16 %v159_v34, %v159_v34 }
 0x20b   :  { %v1804_v35 = vpop.f32.mrf.mxu1 }
 0x20d   :  { %v162_v36 = vpop.f32.mrf.mxu1 }
 0x20e   :  { %v1986_v37 = vpack.i.bf16 %v162_v36, %v159_v34  ;;  %v2209_v39 = vpack.c.bf16 %v162_v36, %v162_v36 }
 0x20f   :  { %v1805_v38 = vpop.f32.mrf.mxu1 }
 0x210   :  { %1987 = vrot.lane.b32.xlu1 %v1986_v37, %s2097_s1  ;;  %1982 = vrot.lane.b32.xlu0 %v1986_v37, %s2098_s16 }
 0x214   :  { %1992 = vrot.lane.b32.xlu1 %v1986_v37, %s2099_s2  ;;  %245 = vrot.lane.b32.xlu0 %v2209_v39, %s2100_s17 }
 0x218   :  { %195 = vrot.lane.b32.xlu1 %v186_v40, %s2100_s17 }
 0x282   :  { %v1988_v41 = vpop.permute.xlu1 %1987  ;;  %v1983_v42 = vpop.permute.xlu0 %1982 }
 0x283   :  { %v1985_v43 = vunpack.i.h.bf16 %v1983_v42  ;;  %v1984_v44 = vunpack.i.l.bf16 %v1983_v42  ;;  %v1990_v45 = vunpack.i.h.bf16 %v1988_v41  ;;  %v1989_v46 = vunpack.i.l.bf16 %v1988_v41 }
 0x285   :  { %v2214_v47 = vpack.c.bf16 %v1985_v43, %v1985_v43  ;;  %v2216_v48 = vpack.c.bf16 %v1984_v44, %v1984_v44  ;;  %v2223_v52 = vpack.c.bf16 %v1990_v45, %v1990_v45  ;;  %v2225_v53 = vpack.c.bf16 %v1989_v46, %v1989_v46 }
 0x286   :  { %v1993_v49 = vpop.permute.xlu1 %1992  ;;  %v246_v50 = vpop.permute.xlu0 %245 }
 0x287   :  { %294 = vrot.lane.b32.xlu1 %v2216_v48, %s2100_s17  ;;  %343 = vrot.lane.b32.xlu0 %v2214_v47, %s2100_s17  ;;  %v251_v51 = vsel %vm197_vm2, %v246_v50, 0  ;;  %v1995_v54 = vunpack.i.h.bf16 %v1993_v49  ;;  %v1994_v55 = vunpack.i.l.bf16 %v1993_v49 }
 0x288   :  { %1813 = vmatpush3.bf16.xpose.msra.mxu0 %v251_v51 }
 0x289   :  { %1824 = vmatprep.subr.bf16.mxu0 %v2095_v15  ;;  %v2233_v58 = vpack.c.bf16 %v1995_v54, %v1995_v54  ;;  %v2235_v59 = vpack.c.bf16 %v1994_v55, %v1994_v55 }
 0x28a   :  { %v196_v56 = vpop.permute.xlu1 %195 }
 0x28b   :  { %v202_v57 = vsel %vm197_vm2, %v196_v56, 0  ;;  %392 = vrot.lane.b32.xlu1 %v2225_v53, %s2100_s17  ;;  %441 = vrot.lane.b32.xlu0 %v2223_v52, %s2100_s17 }
 0x28c   :  { %1807 = vmatpush3.bf16.xpose.msra.mxu1 %v202_v57 }
 0x28d   :  { %1818 = vmatprep.subr.bf16.mxu1 %v2095_v15 }
 0x28f   :  { %490 = vrot.lane.b32.xlu1 %v2235_v59, %s2100_s17  ;;  %539 = vrot.lane.b32.xlu0 %v2233_v58, %s2100_s17 }
 0x290   :  { %1815 = vmatmul.mubr.msk.bf16.vlgmr.msra.gmra.mxu0 %vm197_vm2, %v2209_v39 }
 0x291   :  { %1826 = vmatprep.mubr.msk.bf16.mxu0 %vm2096_vm1, %v2095_v15 }
 0x293   :  { %1809 = vmatmul.mubr.msk.bf16.vlgmr.msra.gmra.mxu1 %vm197_vm2, %v186_v40  ;;  %691 = vrot.lane.b32.xlu1 %v186_v40, %s2101_s18 }
 0x294   :  { %1820 = vmatprep.mubr.msk.bf16.mxu1 %vm2096_vm1, %v2095_v15 }
 0x2f9   :  { %v295_v60 = vpop.permute.xlu1 %294  ;;  %v344_v61 = vpop.permute.xlu0 %343 }
 0x2fa   :  { %v300_v62 = vsel %vm197_vm2, %v295_v60, 0  ;;  %v349_v63 = vsel %vm197_vm2, %v344_v61, 0 }
 0x2fb   :  { %1819 = vmatpush3.bf16.xpose.msra.mxu1 %v300_v62  ;;  %1825 = vmatpush3.bf16.xpose.msra.mxu0 %v349_v63 }
 0x2fc   :  { %1830 = vmatprep.subr.bf16.mxu1 %v2095_v15  ;;  %1836 = vmatprep.subr.bf16.mxu0 %v2095_v15 }
 0x2fd   :  { %v393_v2 = vpop.permute.xlu1 %392  ;;  %v442_v3 = vpop.permute.xlu0 %441 }
 0x2fe   :  { %v398_v4 = vsel %vm197_vm2, %v393_v2, 0  ;;  %v447_v5 = vsel %vm197_vm2, %v442_v3, 0 }
 0x301   :  { %v491_v6 = vpop.permute.xlu1 %490  ;;  %v540_v7 = vpop.permute.xlu0 %539 }
 0x302   :  { %1821 = vmatmul.mubr.msk.bf16.vlgmr.msra.gmra.mxu1 %vm197_vm2, %v2216_v48  ;;  %1827 = vmatmul.mubr.msk.bf16.vlgmr.msra.gmra.mxu0 %vm197_vm2, %v2214_v47  ;;  %v496_v8 = vsel %vm197_vm2, %v491_v6, 0  ;;  %v545_v9 = vsel %vm197_vm2, %v540_v7, 0 }
 0x303   :  { %1831 = vmatpush3.bf16.xpose.msra.mxu1 %v398_v4  ;;  %1837 = vmatpush3.bf16.xpose.msra.mxu0 %v447_v5 }
 0x304   :  { %1832 = vmatprep.mubr.msk.bf16.mxu1 %vm2096_vm1, %v2095_v15  ;;  %1838 = vmatprep.mubr.msk.bf16.mxu0 %vm2096_vm1, %v2095_v15 }
 0x305   :  { %1842 = vmatprep.subr.bf16.mxu1 %v2095_v15  ;;  %1848 = vmatprep.subr.bf16.mxu0 %v2095_v15  ;;  %v692_v10 = vpop.permute.xlu1 %691 }
 0x306   :  { %v698_v11 = vsel %vm696_vm3, %v692_v10, 0 }
 0x30a   :  { %1833 = vmatmul.mubr.msk.bf16.vlgmr.msra.gmra.mxu1 %vm197_vm2, %v2225_v53  ;;  %1839 = vmatmul.mubr.msk.bf16.vlgmr.msra.gmra.mxu0 %vm197_vm2, %v2223_v52 }
 0x30b   :  { %1843 = vmatpush3.bf16.xpose.msra.mxu1 %v496_v8  ;;  %1849 = vmatpush3.bf16.xpose.msra.mxu0 %v545_v9 }
 0x30c   :  { %1844 = vmatprep.mubr.msk.bf16.mxu1 %vm2096_vm1, %v2095_v15  ;;  %1850 = vmatprep.mubr.msk.bf16.mxu0 %vm2096_vm1, %v2095_v15 }
 0x30d   :  { %1854 = vmatprep.subr.bf16.mxu1 %v2095_v15  ;;  %1860 = vmatprep.subr.bf16.mxu0 %v2095_v15 }
 0x312   :  { %1845 = vmatmul.mubr.msk.bf16.vlgmr.msra.gmra.mxu1 %vm197_vm2, %v2235_v59  ;;  %1851 = vmatmul.mubr.msk.bf16.vlgmr.msra.gmra.mxu0 %vm197_vm2, %v2233_v58 }
 0x313   :  { %1855 = vmatpush3.bf16.msra.mxu1 %v698_v11  ;;  %1862 = vmatprep.mubr.msk.bf16.mxu0 %vm2096_vm1, %v2095_v15 }
 0x314   :  { %1856 = vmatprep.mubr.msk.bf16.mxu1 %vm2096_vm1, %v2095_v15  ;;  %1866 = vmatprep.subr.bf16.mxu1 %v2095_v15 }
 0x350   :  { %v287_v12 = vpop.f32.mrf.mxu0 }
 0x351   :  { %v588_v13 = vmul.f32 0.17677669, %v287_v12 }
 0x352   :  { %v1816_v14 = vpop.f32.mrf.mxu0 }
 0x353   :  { %v598_v16 = vsel %vm197_vm2, %v588_v13, -inf  ;;  %v238_v17 = vpop.f32.mrf.mxu1 }
 0x354   :  { %599 = vmax.xlane.f32.xlu0 %v598_v16  ;;  %v587_v18 = vmul.f32 0.17677669, %v238_v17  ;;  %v290_v19 = vpop.f32.mrf.mxu0 }
 0x355   :  { %v1810_v20 = vpop.f32.mrf.mxu1 }
 0x356   :  { %v1817_v21 = vpop.f32.mrf.mxu0  ;;  %v595_v22 = vsel %vm197_vm2, %v587_v18, -inf }
 0x357   :  { %596 = vmax.xlane.f32.xlu1 %v595_v22  ;;  %v241_v23 = vpop.f32.mrf.mxu1 }
 0x359   :  { %v1811_v24 = vpop.f32.mrf.mxu1 }
 0x3c2   :  { %v336_v25 = vpop.f32.mrf.mxu1  ;;  %v385_v26 = vpop.f32.mrf.mxu0 }
 0x3c3   :  { %v589_v27 = vmul.f32 0.17677669, %v336_v25  ;;  %v590_v30 = vmul.f32 0.17677669, %v385_v26 }
 0x3c4   :  { %v1822_v28 = vpop.f32.mrf.mxu1  ;;  %v1828_v29 = vpop.f32.mrf.mxu0 }
 0x3c5   :  { %v601_v31 = vsel %vm197_vm2, %v589_v27, -inf  ;;  %v604_v36 = vsel %vm197_vm2, %v590_v30, -inf }
 0x3c6   :  { %v388_v32 = vpop.f32.mrf.mxu0  ;;  %602 = vmax.xlane.f32.xlu0 %v601_v31  ;;  %v339_v33 = vpop.f32.mrf.mxu1 }
 0x3c8   :  { %v1823_v34 = vpop.f32.mrf.mxu1  ;;  %v1829_v35 = vpop.f32.mrf.mxu0 }
 0x3ca   :  { %v483_v37 = vpop.f32.mrf.mxu0  ;;  %605 = vmax.xlane.f32.xlu0 %v604_v36  ;;  %v434_v38 = vpop.f32.mrf.mxu1 }
 0x3cb   :  { %v2292_v40 = vmul.f32 0.17677669, %v483_v37  ;;  %v591_v41 = vmul.f32 0.17677669, %v434_v38 }
 0x3cc   :  { %v1834_v42 = vpop.f32.mrf.mxu1  ;;  %v1840_v43 = vpop.f32.mrf.mxu0 }
 0x3cd   :  { %v610_v44 = vsel %vm197_vm2, %v2292_v40, -inf  ;;  %v607_v45 = vsel %vm197_vm2, %v591_v41, -inf }
 0x3ce   :  { %v486_v46 = vpop.f32.mrf.mxu0  ;;  %611 = vmax.xlane.f32.xlu0 %v610_v44  ;;  %608 = vmax.xlane.f32.xlu1 %v607_v45  ;;  %v437_v49 = vpop.f32.mrf.mxu1 }
 0x3d0   :  { %v1835_v50 = vpop.f32.mrf.mxu1  ;;  %v1841_v51 = vpop.f32.mrf.mxu0 }
 0x3d2   :  { %v532_v54 = vpop.f32.mrf.mxu1  ;;  %v581_v55 = vpop.f32.mrf.mxu0 }
 0x3d3   :  { %v593_v56 = vmul.f32 0.17677669, %v532_v54  ;;  %v2297_v57 = vmul.f32 0.17677669, %v581_v55 }
 0x3d4   :  { %v1846_v60 = vpop.f32.mrf.mxu1  ;;  %v1852_v61 = vpop.f32.mrf.mxu0 }
 0x3d5   :  { %v616_v62 = vsel %vm197_vm2, %v2297_v57, -inf  ;;  %v613_v63 = vsel %vm197_vm2, %v593_v56, -inf }
 0x3d6   :  { %v584_v2 = vpop.f32.mrf.mxu0  ;;  %617 = vmax.xlane.f32.xlu0 %v616_v62  ;;  %614 = vmax.xlane.f32.xlu1 %v613_v63  ;;  %v535_v3 = vpop.f32.mrf.mxu1 }
 0x3d8   :  { %v1847_v4 = vpop.f32.mrf.mxu1  ;;  %v1853_v5 = vpop.f32.mrf.mxu0 }
 0x3dd   :  { %v600_v6 = vpop.xlane.xlu0 %599 }
 0x3de   :  { %v620_v7 = vsub.f32 %v588_v13, %v600_v6 }
 0x3e0   :  { %v597_v8 = vpop.xlane.xlu1 %596  ;;  %v629_v9 = vmul.f32 1.442695, %v620_v7 }
 0x3e1   :  { %v619_v10 = vsub.f32 %v587_v18, %v597_v8 }
 0x3e2   :  { %2008 = vpow2.f32 %v629_v9 }
 0x3e3   :  { %v627_v11 = vmul.f32 1.442695, %v619_v10 }
 0x3e5   :  { %2010 = vpow2.f32 %v627_v11 }
 0x3e7   :  { %788 = vrot.lane.b32.xlu1 %v2216_v48, %s2101_s18 }
 0x3eb   :  { %836 = vrot.lane.b32.xlu1 %v2214_v47, %s2101_s18 }
 0x3ec   :  { %740 = vrot.lane.b32.xlu0 %v2209_v39, %s2101_s18 }
 0x3ef   :  { %v2009_v12 = vpop.eup %2008 }
 0x3f0   :  { %v646_v14 = vsel %vm197_vm2, %v2009_v12, 0.0 }
 0x3f2   :  { %v2309_v16 = vpop.eup %2010 }
 0x3f3   :  { %v643_v47 = vsel %vm197_vm2, %v2309_v16, 0.0 }
 0x40b   :  { %647 = vadd.xlane.f32.xlu0 %v646_v14 }
 0x40f   :  { %644 = vadd.xlane.f32.xlu1 %v643_v47 }
 0x420   :  { %884 = vrot.lane.b32.xlu1 %v2225_v53, %s2101_s18 }
 0x44f   :  { %v603_v39 = vpop.xlane.xlu0 %602 }
 0x450   :  { %v621_v48 = vsub.f32 %v589_v27, %v603_v39 }
 0x452   :  { %v631_v13 = vmul.f32 1.442695, %v621_v48 }
 0x453   :  { %v606_v17 = vpop.xlane.xlu0 %605 }
 0x454   :  { %2012 = vpow2.f32 %v631_v13  ;;  %v622_v18 = vsub.f32 %v590_v30, %v606_v17 }
 0x456   :  { %v633_v19 = vmul.f32 1.442695, %v622_v18  ;;  %v1076_v18 = vld [vmem:[%s2514_s4] sm:$0xf] }
 0x457   :  { %v609_v20 = vpop.xlane.xlu1 %608  ;;  %v612_v23 = vpop.xlane.xlu0 %611 }
 0x458   :  { %2014 = vpow2.f32 %v633_v19  ;;  %v623_v21 = vsub.f32 %v591_v41, %v609_v20  ;;  %v624_v37 = vsub.f32 %v2292_v40, %v612_v23  ;;  %v1092_v20 = vsel %vm696_vm3, %v1076_v18, 0 }
 0x45a   :  { %v635_v22 = vmul.f32 1.442695, %v623_v21  ;;  %v637_v38 = vmul.f32 1.442695, %v624_v37 }
 0x45c   :  { %2016 = vpow2.f32 %v635_v22 }
 0x45f   :  { %v618_v24 = vpop.xlane.xlu0 %617  ;;  %v615_v25 = vpop.xlane.xlu1 %614 }
 0x460   :  { %v625_v26 = vsub.f32 %v593_v56, %v615_v25  ;;  %v626_v41 = vsub.f32 %v2297_v57, %v618_v24 }
 0x461   :  { %v2315_v28 = vpop.eup %2012 }
 0x462   :  { %v639_v29 = vmul.f32 1.442695, %v625_v26  ;;  %v649_v53 = vsel %vm197_vm2, %v2315_v28, 0.0  ;;  %v641_v42 = vmul.f32 1.442695, %v626_v41 }
 0x463   :  { %v741_v27 = vpop.permute.xlu0 %740  ;;  %650 = vadd.xlane.f32.xlu1 %v649_v53  ;;  %v789_v43 = vpop.permute.xlu1 %788 }
 0x464   :  { %v746_v30 = vsel %vm696_vm3, %v741_v27, 0  ;;  %2018 = vpow2.f32 %v639_v29  ;;  %v794_v61 = vsel %vm696_vm3, %v789_v43, 0 }
 0x465   :  { %v2320_v31 = vpop.eup %2014  ;;  %1861 = vmatpush3.bf16.msra.mxu0 %v746_v30  ;;  %2020 = vpow2.f32 %v637_v38 }
 0x466   :  { %v652_v32 = vsel %vm197_vm2, %v2320_v31, 0.0  ;;  %1872 = vmatprep.subr.bf16.mxu0 %v2095_v15  ;;  %2022 = vpow2.f32 %v641_v42 }
 0x467   :  { %653 = vadd.xlane.f32.xlu0 %v652_v32  ;;  %v837_v44 = vpop.permute.xlu1 %836 }
 0x468   :  { %v842_v56 = vsel %vm696_vm3, %v837_v44, 0  ;;  %v1078_v44 = vld [vmem:[%s2514_s4 + $0x8] sm:$0xf] }
 0x469   :  { %v2325_v33 = vpop.eup %2016 }
 0x46a   :  { %v655_v34 = vsel %vm197_vm2, %v2325_v33, 0.0 }
 0x46b   :  { %656 = vadd.xlane.f32.xlu1 %v655_v34 }
 0x471   :  { %v2329_v35 = vpop.eup %2018 }
 0x472   :  { %v661_v36 = vsel %vm197_vm2, %v2329_v35, 0.0  ;;  %v2339_v46 = vpop.eup %2020 }
 0x473   :  { %662 = vadd.xlane.f32.xlu1 %v661_v36  ;;  %v2343_v40 = vpop.eup %2022 }
 0x47d   :  { %932 = vrot.lane.b32.xlu0 %v2223_v52, %s2101_s18  ;;  %v658_v52 = vsel %vm197_vm2, %v2339_v46, 0.0 }
 0x484   :  { %980 = vrot.lane.b32.xlu1 %v2235_v59, %s2101_s18  ;;  %v664_v59 = vsel %vm197_vm2, %v2343_v40, 0.0 }
 0x494   :  { %v648_v45 = vpop.xlane.xlu0 %647 }
 0x495   :  { %2024 = vrcp.f32 %v648_v45 }
 0x498   :  { %v645_v49 = vpop.xlane.xlu1 %644 }
 0x499   :  { %2026 = vrcp.f32 %v645_v49  ;;  %v1270_v49 = vsel %vm696_vm3, %v1078_v44, 0  ;;  %v1726_v44 = vld [vmem:[%s2515_s5] ss:$0 sm:$0xff] }
 0x49c   :  { %659 = vadd.xlane.f32.xlu0 %v658_v52  ;;  %v885_v62 = vpop.permute.xlu1 %884 }
 0x49d   :  { %v890_v9 = vsel %vm696_vm3, %v885_v62, 0 }
 0x4a0   :  { %665 = vadd.xlane.f32.xlu0 %v664_v59 }
 0x4a2   :  { %v2025_v50 = vpop.eup %2024 }
 0x4a3   :  { %v676_v51 = vmul.f32 %v2025_v50, %v2009_v12 }
 0x4a5   :  { %v684_v54 = vpack.c.bf16 %v676_v51, %v676_v51 }
 0x4a6   :  { %v2027_v55 = vpop.eup %2026 }
 0x4a7   :  { %1863 = vmatmul.mubr.msk.bf16.vlgmr.msra.gmra.mxu0 %vm197_vm2, %v684_v54  ;;  %v675_v57 = vmul.f32 %v2027_v55, %v2309_v16  ;;  %v1079_v55 = vld [vmem:[%s2514_s4 + $0xc] sm:$0xf] }
 0x4a8   :  { %1873 = vmatpush3.bf16.msra.mxu0 %v842_v56  ;;  %1874 = vmatprep.mubr.msk.bf16.mxu0 %vm2096_vm1, %v2095_v15  ;;  %v1359_v62 = vsel %vm696_vm3, %v1079_v55, 0 }
 0x4a9   :  { %v683_v60 = vpack.c.bf16 %v675_v57, %v675_v57  ;;  %1884 = vmatprep.subr.bf16.mxu0 %v2095_v15 }
 0x4ab   :  { %1857 = vmatmul.mubr.msk.bf16.vlgmr.msra.gmra.mxu1 %vm197_vm2, %v683_v60 }
 0x4ac   :  { %1867 = vmatpush3.bf16.msra.mxu1 %v794_v61  ;;  %1868 = vmatprep.mubr.msk.bf16.mxu1 %vm2096_vm1, %v2095_v15 }
 0x4ad   :  { %1878 = vmatprep.subr.bf16.mxu1 %v2095_v15 }
 0x4b6   :  { %1028 = vrot.lane.b32.xlu0 %v2233_v58, %s2101_s18 }
 0x4ec   :  { %v651_v63 = vpop.xlane.xlu1 %650 }
 0x4ed   :  { %2028 = vrcp.f32 %v651_v63 }
 0x4f0   :  { %v654_v2 = vpop.xlane.xlu0 %653 }
 0x4f1   :  { %2030 = vrcp.f32 %v654_v2 }
 0x4f4   :  { %v657_v3 = vpop.xlane.xlu1 %656  ;;  %v933_v10 = vpop.permute.xlu0 %932 }
 0x4f5   :  { %2032 = vrcp.f32 %v657_v3  ;;  %v938_v14 = vsel %vm696_vm3, %v933_v10, 0 }
 0x4fa   :  { %v2029_v4 = vpop.eup %2028 }
 0x4fb   :  { %v677_v5 = vmul.f32 %v2029_v4, %v2315_v28 }
 0x4fc   :  { %v663_v6 = vpop.xlane.xlu1 %662 }
 0x4fd   :  { %v685_v7 = vpack.c.bf16 %v677_v5, %v677_v5  ;;  %2034 = vrcp.f32 %v663_v6 }
 0x4fe   :  { %v2031_v8 = vpop.eup %2030 }
 0x4ff   :  { %1869 = vmatmul.mubr.msk.bf16.vlgmr.msra.gmra.mxu1 %vm197_vm2, %v685_v7  ;;  %v678_v58 = vmul.f32 %v2031_v8, %v2320_v31  ;;  %v1077_v31 = vld [vmem:[%s2514_s4 + $0x4] sm:$0xf] }
 0x500   :  { %1879 = vmatpush3.bf16.msra.mxu1 %v890_v9  ;;  %1880 = vmatprep.mubr.msk.bf16.mxu1 %vm2096_vm1, %v2095_v15  ;;  %v981_v47 = vpop.permute.xlu1 %980  ;;  %v1181_v34 = vsel %vm696_vm3, %v1077_v31, 0 }
 0x501   :  { %v686_v11 = vpack.c.bf16 %v678_v58, %v678_v58  ;;  %1890 = vmatprep.subr.bf16.mxu1 %v2095_v15  ;;  %v986_v48 = vsel %vm696_vm3, %v981_v47, 0 }
 0x502   :  { %v2033_v12 = vpop.eup %2032 }
 0x503   :  { %1875 = vmatmul.mubr.msk.bf16.vlgmr.msra.gmra.mxu0 %vm197_vm2, %v686_v11  ;;  %v679_v16 = vmul.f32 %v2033_v12, %v2325_v33 }
 0x504   :  { %1885 = vmatpush3.bf16.msra.mxu0 %v938_v14  ;;  %1886 = vmatprep.mubr.msk.bf16.mxu0 %vm2096_vm1, %v2095_v15 }
 0x505   :  { %1896 = vmatprep.subr.bf16.mxu0 %v2095_v15  ;;  %v687_v39 = vpack.c.bf16 %v679_v16, %v679_v16 }
 0x507   :  { %1881 = vmatmul.mubr.msk.bf16.vlgmr.msra.gmra.mxu1 %vm197_vm2, %v687_v39 }
 0x508   :  { %1891 = vmatpush3.bf16.msra.mxu1 %v986_v48  ;;  %1892 = vmatprep.mubr.msk.bf16.mxu1 %vm2096_vm1, %v2095_v15 }
 0x509   :  { %1902 = vmatprep.subr.bf16.mxu1 %v2095_v15 }
 0x50a   :  { %v2035_v13 = vpop.eup %2034 }
 0x50b   :  { %v681_v17 = vmul.f32 %v2035_v13, %v2329_v35 }
 0x50d   :  { %v689_v19 = vpack.c.bf16 %v681_v17, %v681_v17 }
 0x50f   :  { %1893 = vmatmul.mubr.msk.bf16.vlgmr.msra.gmra.mxu1 %vm197_vm2, %v689_v19 }
 0x510   :  { %1903 = vmatpush3.bf16.msra.mxu1 %v1092_v20  ;;  %1904 = vmatprep.mubr.msk.bf16.mxu1 %vm2096_vm1, %v2095_v15 }
 0x511   :  { %1914 = vmatprep.subr.bf16.mxu1 %v2095_v15 }
 0x525   :  { %v660_v21 = vpop.xlane.xlu0 %659 }
 0x526   :  { %2036 = vrcp.f32 %v660_v21 }
 0x529   :  { %v666_v22 = vpop.xlane.xlu0 %665 }
 0x52a   :  { %2038 = vrcp.f32 %v666_v22 }
 0x52d   :  { %v1029_v25 = vpop.permute.xlu0 %1028 }
 0x52e   :  { %v1034_v29 = vsel %vm696_vm3, %v1029_v25, 0 }
 0x533   :  { %v2037_v23 = vpop.eup %2036 }
 0x534   :  { %v680_v24 = vmul.f32 %v2037_v23, %v2339_v46 }
 0x536   :  { %v688_v26 = vpack.c.bf16 %v680_v24, %v680_v24 }
 0x537   :  { %v2039_v28 = vpop.eup %2038 }
 0x538   :  { %1887 = vmatmul.mubr.msk.bf16.vlgmr.msra.gmra.mxu0 %vm197_vm2, %v688_v26  ;;  %v682_v53 = vmul.f32 %v2039_v28, %v2343_v40 }
 0x539   :  { %1897 = vmatpush3.bf16.msra.mxu0 %v1034_v29  ;;  %1898 = vmatprep.mubr.msk.bf16.mxu0 %vm2096_vm1, %v2095_v15 }
 0x53a   :  { %1908 = vmatprep.subr.bf16.mxu0 %v2095_v15  ;;  %v690_v27 = vpack.c.bf16 %v682_v53, %v682_v53 }
 0x540   :  { %1899 = vmatmul.mubr.msk.bf16.vlgmr.msra.gmra.mxu0 %vm197_vm2, %v690_v27 }
 0x541   :  { %1909 = vmatpush3.bf16.msra.mxu0 %v1092_v20  ;;  %1910 = vmatprep.mubr.msk.bf16.mxu0 %vm2096_vm1, %v2095_v15 }
 0x542   :  { %1920 = vmatprep.subr.bf16.mxu0 %v2095_v15 }
 0x567   :  { %v782_v30 = vpop.f32.mrf.mxu0 }
 0x568   :  { %v1081_v32 = vpack.c.bf16 %v782_v30, %v782_v30 }
 0x569   :  { %v1864_v33 = vpop.f32.mrf.mxu0 }
 0x56a   :  { %1911 = vmatmul.mubr.msk.bf16.vlgmr.msra.gmra.mxu0 %vm197_vm2, %v1081_v32 }
 0x56b   :  { %v734_v35 = vpop.f32.mrf.mxu1  ;;  %v785_v36 = vpop.f32.mrf.mxu0  ;;  %1921 = vmatpush3.bf16.msra.mxu0 %v1181_v34  ;;  %1922 = vmatprep.mubr.msk.bf16.mxu0 %vm2096_vm1, %v2095_v15 }
 0x56c   :  { %v1080_v37 = vpack.c.bf16 %v734_v35, %v734_v35  ;;  %1932 = vmatprep.subr.bf16.mxu0 %v2095_v15 }
 0x56d   :  { %v1858_v38 = vpop.f32.mrf.mxu1  ;;  %v1865_v41 = vpop.f32.mrf.mxu0 }
 0x56e   :  { %1905 = vmatmul.mubr.msk.bf16.vlgmr.msra.gmra.mxu1 %vm197_vm2, %v1080_v37 }
 0x56f   :  { %v737_v42 = vpop.f32.mrf.mxu1  ;;  %1915 = vmatpush3.bf16.msra.mxu1 %v1181_v34  ;;  %1916 = vmatprep.mubr.msk.bf16.mxu1 %vm2096_vm1, %v2095_v15 }
 0x570   :  { %1926 = vmatprep.subr.bf16.mxu1 %v2095_v15 }
 0x571   :  { %v1859_v43 = vpop.f32.mrf.mxu1 }
 0x5bf   :  { %v830_v45 = vpop.f32.mrf.mxu1 }
 0x5c0   :  { %v1082_v46 = vpack.c.bf16 %v830_v45, %v830_v45 }
 0x5c1   :  { %v1870_v52 = vpop.f32.mrf.mxu1 }
 0x5c2   :  { %1917 = vmatmul.mubr.msk.bf16.vlgmr.msra.gmra.mxu1 %vm197_vm2, %v1082_v46 }
 0x5c3   :  { %v833_v40 = vpop.f32.mrf.mxu1  ;;  %v878_v59 = vpop.f32.mrf.mxu0  ;;  %1927 = vmatpush3.bf16.msra.mxu1 %v1270_v49  ;;  %1928 = vmatprep.mubr.msk.bf16.mxu1 %vm2096_vm1, %v2095_v15 }
 0x5c4   :  { %v1083_v50 = vpack.c.bf16 %v878_v59, %v878_v59  ;;  %1938 = vmatprep.subr.bf16.mxu1 %v2095_v15 }
 0x5c5   :  { %v1871_v51 = vpop.f32.mrf.mxu1  ;;  %v1876_v54 = vpop.f32.mrf.mxu0 }
 0x5c6   :  { %1923 = vmatmul.mubr.msk.bf16.vlgmr.msra.gmra.mxu0 %vm197_vm2, %v1083_v50 }
 0x5c7   :  { %v881_v56 = vpop.f32.mrf.mxu0  ;;  %1933 = vmatpush3.bf16.msra.mxu0 %v1270_v49  ;;  %1934 = vmatprep.mubr.msk.bf16.mxu0 %vm2096_vm1, %v2095_v15  ;;  %v926_v57 = vpop.f32.mrf.mxu1 }
 0x5c8   :  { %1944 = vmatprep.subr.bf16.mxu0 %v2095_v15  ;;  %v1084_v60 = vpack.c.bf16 %v926_v57, %v926_v57 }
 0x5c9   :  { %v1877_v61 = vpop.f32.mrf.mxu0  ;;  %v1882_v63 = vpop.f32.mrf.mxu1 }
 0x5ca   :  { %1929 = vmatmul.mubr.msk.bf16.vlgmr.msra.gmra.mxu1 %vm197_vm2, %v1084_v60 }
 0x5cb   :  { %v929_v2 = vpop.f32.mrf.mxu1  ;;  %1939 = vmatpush3.bf16.msra.mxu1 %v1359_v62  ;;  %1940 = vmatprep.mubr.msk.bf16.mxu1 %vm2096_vm1, %v2095_v15 }
 0x5cc   :  { %1950 = vmatprep.subr.bf16.mxu1 %v2095_v15 }
 0x5cd   :  { %v1883_v3 = vpop.f32.mrf.mxu1 }
 0x5cf   :  { %v1022_v4 = vpop.f32.mrf.mxu1 }
 0x5d0   :  { %v1086_v5 = vpack.c.bf16 %v1022_v4, %v1022_v4 }
 0x5d1   :  { %v1894_v6 = vpop.f32.mrf.mxu1 }
 0x5d2   :  { %1941 = vmatmul.mubr.msk.bf16.vlgmr.msra.gmra.mxu1 %vm197_vm2, %v1086_v5 }
 0x5d3   :  { %v1025_v7 = vpop.f32.mrf.mxu1  ;;  %1954 = vmatprep.mubr.msk.bf16.mxu1 %vm2096_vm1, %v2095_v15 }
 0x5d5   :  { %v1895_v8 = vpop.f32.mrf.mxu1 }
 0x5f8   :  { %v974_v9 = vpop.f32.mrf.mxu0 }
 0x5f9   :  { %v1085_v58 = vpack.c.bf16 %v974_v9, %v974_v9 }
 0x5fa   :  { %v1888_v10 = vpop.f32.mrf.mxu0 }
 0x5fb   :  { %1935 = vmatmul.mubr.msk.bf16.vlgmr.msra.gmra.mxu0 %vm197_vm2, %v1085_v58 }
 0x5fc   :  { %v977_v11 = vpop.f32.mrf.mxu0  ;;  %1945 = vmatpush3.bf16.msra.mxu0 %v1359_v62  ;;  %1946 = vmatprep.mubr.msk.bf16.mxu0 %vm2096_vm1, %v2095_v15 }
 0x5fd   :  { %1958 = vmatprep.subr.bf16.mxu0 %v2095_v15 }
 0x5fe   :  { %v1889_v12 = vpop.f32.mrf.mxu0 }
 0x600   :  { %v1070_v14 = vpop.f32.mrf.mxu0 }
 0x601   :  { %v1087_v16 = vpack.c.bf16 %v1070_v14, %v1070_v14 }
 0x602   :  { %v1900_v47 = vpop.f32.mrf.mxu0 }
 0x603   :  { %1947 = vmatmul.mubr.msk.bf16.vlgmr.msra.gmra.mxu0 %vm197_vm2, %v1087_v16 }
 0x604   :  { %v1073_v39 = vpop.f32.mrf.mxu0  ;;  %1966 = vmatprep.mubr.msk.bf16.mxu0 %vm2096_vm1, %v2095_v15 }
 0x606   :  { %v1901_v48 = vpop.f32.mrf.mxu0 }
 0x62a   :  { %v1171_v13 = vpop.f32.mrf.mxu0 }
 0x62b   :  { %v1451_v57 = vsel %vm61_vm0, %v1171_v13, 0.0  ;;  %v1998_v13 = vld [vmem:[%s2518_s8 + $0x8] sm:$0xff]  }
 0x62c   :  { %v1912_v17 = vpop.f32.mrf.mxu0  ;;  %1951 = vmatpush3.bf16.msra.mxu1 %v1998_v13 }
 0x62d   :  { %v1999_v17 = vld [vmem:[%s2518_s8] sm:$0xff]   ;;  %1952 = vmatprep.subr.bf16.mxu1 %v2095_v15 }
 0x62e   :  { %v1128_v18 = vpop.f32.mrf.mxu1  ;;  %v1174_v19 = vpop.f32.mrf.mxu0 }
 0x62f   :  { %v1444_v35 = vsel %vm61_vm0, %v1128_v18, 0.0 }
 0x630   :  { %v1906_v20 = vpop.f32.mrf.mxu1  ;;  %v1913_v21 = vpop.f32.mrf.mxu0  ;;  %1953 = vmatpush3.bf16.msra.mxu1 %v1999_v17 }
 0x632   :  { %v1131_v22 = vpop.f32.mrf.mxu1 }
 0x634   :  { %v1907_v23 = vpop.f32.mrf.mxu1 }
 0x682   :  { %v1217_v24 = vpop.f32.mrf.mxu1 }
 0x683   :  { %v1445_v33 = vsel %vm61_vm0, %v1217_v24, 0.0 }
 0x684   :  { %v1918_v25 = vpop.f32.mrf.mxu1  ;;  %v1446_v37 = vadd.f32 %v1445_v33, %v1444_v35  ;;  %v2001_v35 = vld [vmem:[%s2520_s10 + $0x10] sm:$0xff]  }
 0x686   :  { %v1220_v26 = vpop.f32.mrf.mxu1  ;;  %v1260_v28 = vpop.f32.mrf.mxu0 }
 0x687   :  { %v1452_v55 = vsel %vm61_vm0, %v1260_v28, 0.0  ;;  %v1727_v26 = vld [vmem:[%s2516_s6] ss:$0 sm:$0xff] }
 0x688   :  { %v1919_v29 = vpop.f32.mrf.mxu1  ;;  %v1924_v53 = vpop.f32.mrf.mxu0  ;;  %v1453_v61 = vadd.f32 %v1452_v55, %v1451_v57 }
 0x68a   :  { %v1263_v27 = vpop.f32.mrf.mxu0  ;;  %v1306_v30 = vpop.f32.mrf.mxu1 }
 0x68b   :  { %v1447_v36 = vsel %vm61_vm0, %v1306_v30, 0.0  ;;  %v1728_v27 = vld [vmem:[%s2517_s7] ss:$0 sm:$0xff] }
 0x68c   :  { %v1925_v31 = vpop.f32.mrf.mxu0  ;;  %v1930_v32 = vpop.f32.mrf.mxu1  ;;  %v1448_v41 = vadd.f32 %v1447_v36, %v1446_v37  ;;  %v2002_v36 = vld [vmem:[%s2520_s10 + $0x8] sm:$0xff]   ;;  %v2003_v37 = vld [vmem:[%s2520_s10] sm:$0xff]  }
 0x68e   :  { %v1309_v34 = vpop.f32.mrf.mxu1 }
 0x68f   :  { %v2000_v34 = vld [vmem:[%s2520_s10 + $0x18] sm:$0xff]  }
 0x690   :  { %v1931_v38 = vpop.f32.mrf.mxu1  ;;  %1959 = vmatpush3.bf16.msra.mxu0 %v2000_v34 }
 0x691   :  { %1960 = vmatprep.subr.bf16.mxu0 %v2095_v15  ;;  %v1729_v38 = vld [vmem:[%s2519_s9] ss:$0 sm:$0xff] }
 0x692   :  { %v1395_v42 = vpop.f32.mrf.mxu1 }
 0x693   :  { %v1449_v43 = vsel %vm61_vm0, %v1395_v42, 0.0 }
 0x694   :  { %v1450_v45 = vadd.f32 %v1449_v43, %v1448_v41  ;;  %v1942_v46 = vpop.f32.mrf.mxu1  ;;  %1961 = vmatpush3.bf16.msra.mxu0 %v2001_v35 }
 0x695   :  { %1962 = vmatprep.subr.bf16.mxu0 %v2095_v15 }
 0x696   :  { %v1465_v49 = vadd.f32 %v1726_v44, %v1450_v45  ;;  %v1398_v52 = vpop.f32.mrf.mxu1 }
 0x698   :  { %v1943_v40 = vpop.f32.mrf.mxu1  ;;  %v2448_v59 = vadd.f32 %v1465_v49, %v2174_v0  ;;  %1963 = vmatpush3.bf16.msra.mxu0 %v2002_v36 }
 0x699   :  { %1964 = vmatprep.subr.bf16.mxu0 %v2095_v15 }
 0x69a   :  { %v1471_v50 = vsel %vm61_vm0, %v2448_v59, 0.0 }
 0x69b   :  { %1472 = vadd.xlane.f32.xlu1 %v1471_v50 }
 0x69c   :  { %1965 = vmatpush3.bf16.msra.mxu0 %v2003_v37 }
 0x6bb   :  { %v1349_v51 = vpop.f32.mrf.mxu0 }
 0x6bc   :  { %v1454_v60 = vsel %vm61_vm0, %v1349_v51, 0.0 }
 0x6bd   :  { %v1936_v54 = vpop.f32.mrf.mxu0  ;;  %v1455_v63 = vadd.f32 %v1454_v60, %v1453_v61  ;;  %v1733_v61 = vld [vmem:[%s2521_s11] ss:$0 sm:$0xff] }
 0x6bf   :  { %v1352_v56 = vpop.f32.mrf.mxu0 }
 0x6c1   :  { %v1937_v62 = vpop.f32.mrf.mxu0 }
 0x6c3   :  { %v1438_v2 = vpop.f32.mrf.mxu0 }
 0x6c4   :  { %v1456_v0 = vsel %vm61_vm0, %v1438_v2, 0.0 }
 0x6c5   :  { %v1457_v3 = vadd.f32 %v1456_v0, %v1455_v63  ;;  %v1948_v4 = vpop.f32.mrf.mxu0 }
 0x6c7   :  { %v1466_v5 = vadd.f32 %v1726_v44, %v1457_v3  ;;  %v1441_v6 = vpop.f32.mrf.mxu0 }
 0x6c9   :  { %v1949_v7 = vpop.f32.mrf.mxu0  ;;  %v2457_v8 = vadd.f32 %v1466_v5, %v2176_v1 }
 0x6cb   :  { %v1474_v9 = vsel %vm61_vm0, %v2457_v8, 0.0 }
 0x6cc   :  { %1475 = vadd.xlane.f32.xlu0 %v1474_v9 }
 0x724   :  { %v1473_v58 = vpop.xlane.xlu1 %1472 }
 0x725   :  { %v1477_v10 = vmul.f32 0.03125, %v1473_v58 }
 0x727   :  { %v1479_v11 = vsub.f32 %v2448_v59, %v1477_v10 }
 0x729   :  { %v1481_v12 = vmul.f32 %v1479_v11, %v1479_v11 }
 0x72b   :  { %v1483_v14 = vsel %vm61_vm0, %v1481_v12, 0.0 }
 0x72c   :  { %1484 = vadd.xlane.f32.xlu0 %v1483_v14 }
 0x755   :  { %v1476_v16 = vpop.xlane.xlu0 %1475 }
 0x756   :  { %v1478_v47 = vmul.f32 0.03125, %v1476_v16 }
 0x758   :  { %v1480_v39 = vsub.f32 %v2457_v8, %v1478_v47 }
 0x75a   :  { %v1482_v48 = vmul.f32 %v1480_v39, %v1480_v39 }
 0x75c   :  { %v1486_v1 = vsel %vm61_vm0, %v1482_v48, 0.0 }
 0x75d   :  { %1487 = vadd.xlane.f32.xlu0 %v1486_v1 }
 0x7b5   :  { %v1485_v18 = vpop.xlane.xlu0 %1484 }
 0x7b6   :  { %v1489_v19 = vmul.f32 0.03125, %v1485_v18 }
 0x7b8   :  { %v1491_v20 = vadd.f32 1e-05, %v1489_v19 }
 0x7ba   :  { %2040 = vrsqrt.f32 %v1491_v20 }
 0x7c7   :  { %v2041_v24 = vpop.eup %2040 }
 0x7c8   :  { %v1495_v25 = vmul.f32 %v2041_v24, %v1479_v11 }
 0x7ca   :  { %v1503_v53 = vmul.f32 %v1727_v26, %v1495_v25 }
 0x7cc   :  { %v1511_v31 = vadd.f32 %v1728_v27, %v1503_v53 }
 0x7e6   :  { %v1488_v21 = vpop.xlane.xlu0 %1487 }
 0x7e7   :  { %v1490_v22 = vmul.f32 0.03125, %v1488_v21 }
 0x7e9   :  { %v1492_v23 = vadd.f32 1e-05, %v1490_v22 }
 0x7eb   :  { %2042 = vrsqrt.f32 %v1492_v23 }
 0x7f8   :  { %v2043_v28 = vpop.eup %2042 }
 0x7f9   :  { %v1496_v29 = vmul.f32 %v2043_v28, %v1480_v39 }
 0x7fb   :  { %v1504_v30 = vmul.f32 %v1727_v26, %v1496_v29 }
 0x7fd   :  { %v1512_v32 = vadd.f32 %v1728_v27, %v1504_v30 }
 0x7ff   :  { %v1513_v33 = vpack.c.bf16 %v1512_v32, %v1511_v31 }
 0x801   :  { %1955 = vmatmul.mubr.msk.bf16.vlgmr.msra.gmra.mxu1 %vm61_vm0, %v1513_v33 }
 0x8c1   :  { %v1574_v41 = vpop.f32.mrf.mxu1 }
 0x8c2   :  { %v1575_v42 = vadd.f32 %v1729_v38, %v1574_v41 }
 0x8c3   :  { %v1956_v43 = vpop.f32.mrf.mxu1 }
 0x8c4   :  { %v1583_v44 = vmul.f32 0.70710677, %v1575_v42  ;;  %v1581_v51 = vmul.f32 0.5, %v1575_v42 }
 0x8c5   :  { %v1577_v45 = vpop.f32.mrf.mxu1 }
 0x8c6   :  { %2044 = verf.f32 %v1583_v44  ;;  %v1578_v46 = vadd.f32 %v1729_v38, %v1577_v45 }
 0x8c7   :  { %v1957_v49 = vpop.f32.mrf.mxu1 }
 0x8c8   :  { %v1584_v52 = vmul.f32 0.70710677, %v1578_v46  ;;  %v1582_v54 = vmul.f32 0.5, %v1578_v46 }
 0x8ca   :  { %2046 = verf.f32 %v1584_v52 }
 0x8d3   :  { %v2045_v15 = vpop.eup %2044 }
 0x8d4   :  { %v1587_v40 = vadd.f32 1.0, %v2045_v15 }
 0x8d6   :  { %v1589_v56 = vmul.f32 %v1587_v40, %v1581_v51 }
 0x8d7   :  { %v2047_v50 = vpop.eup %2046 }
 0x8d8   :  { %v1588_v55 = vadd.f32 1.0, %v2047_v50 }
 0x8da   :  { %v1590_v57 = vmul.f32 %v1588_v55, %v1582_v54 }
 0x8dc   :  { %v1591_v60 = vpack.c.bf16 %v1590_v57, %v1589_v56 }
 0x8de   :  { %1967 = vmatmul.mubr.msk.bf16.vlgmr.msra.gmra.mxu0 %vm1631_vm4, %v1591_v60 }
 0x99e   :  { %v1669_v62 = vpop.f32.mrf.mxu0 }
 0x99f   :  { %v1670_v63 = vadd.f32 %v1733_v61, %v1669_v62 }
 0x9a0   :  { %v1968_v2 = vpop.f32.mrf.mxu0 }
 0x9a1   :  { %v1676_v0 = vadd.f32 %v1670_v63, %v2448_v59 }
 0x9a2   :  { %v1672_v3 = vpop.f32.mrf.mxu0 }
 0x9a3   :  { %1678 = vst.msk [vmem:[#allocation5] sm:$0xff] %vm61_vm0, %v1676_v0  ;;  %v1673_v4 = vadd.f32 %v1733_v61, %v1672_v3 }
 0x9a4   :  { %v1969_v5 = vpop.f32.mrf.mxu0 }
 0x9a5   :  { %v1677_v6 = vadd.f32 %v1673_v4, %v2457_v8 }
 0x9a7   :  { %1679 = vst.msk [vmem:[#allocation5 + $0x8] sm:$0xff] %vm61_vm0, %v1677_v6 }
 0x9a8   :  { %2079 = shalt.err (!%p2076_p9)
}
 0x9a9   :  { %1691 = dma.vmem_to_hbm [thread:$0]  %s1686_s23, 256, %s2522_s12, [#allocation4], %s2093_s24, %s2093_s24, %s2094_s25  }
 0x9aa   :  { %2090 = dma.done.wait [#allocation4], 256  }
 0x9ab   :  { %2091 = vsyncadd [#allocation4], 4294967040 }
 0x9ac   :  { %1695 = vsyncpa [#allocation3], 1 }
 0x9ad   :  { %1696 = vsyncpa [#allocation4], 1 }

// kernel: transformer_forward.2
= control target key start
LH: loop header
LB: loop body
LE: loop exit
PB: predicated region body
PF: predicated region fallthrough
CT: control target
= control target key end

     0   :  { %17 = vsyncpa [#allocation3], 0  ;;  %s2052_s21 = smov [#allocation2]   ;;  %s2467_s0 = inlined_call_operand.vmem [shape: f32[2,8,32], index: 0, kind: input, shape index: {}, may-alias: {0,12}]   ;;  %s2468_s1 = inlined_call_operand.vmem [shape: f32[1,32], index: 1, kind: input, shape index: {}]   ;;  %s2469_s2 = inlined_call_operand.vmem [shape: f32[1,32], index: 2, kind: input, shape index: {}]   ;;  %s2470_s3 = inlined_call_operand.vmem [shape: bf16[32,96], index: 3, kind: input, shape index: {}]   ;;  %s2471_s4 = inlined_call_operand.vmem [shape: bf16[4,8,32], index: 4, kind: input, shape index: {}]   ;;  %s2472_s5 = inlined_call_operand.hbm [shape: f32[1,32], index: 5, kind: input, shape index: {}]   ;;  %s2473_s6 = inlined_call_operand.vmem [shape: f32[1,32], index: 6, kind: input, shape index: {}]   ;;  %s2474_s7 = inlined_call_operand.vmem [shape: f32[1,32], index: 7, kind: input, shape index: {}]   ;;  %s2475_s8 = inlined_call_operand.vmem [shape: bf16[32,64], index: 8, kind: input, shape index: {}]   ;;  %s2476_s9 = inlined_call_operand.vmem [shape: f32[1,64], index: 9, kind: input, shape index: {}]   ;;  %s2477_s10 = inlined_call_operand.vmem [shape: bf16[64,32], index: 10, kind: input, shape index: {}]   ;;  %s2478_s11 = inlined_call_operand.vmem [shape: f32[1,32], index: 11, kind: input, shape index: {}]   ;;  %s2479_s12 = inlined_call_operand.vmem [shape: f32[2,8,32], index: 12, kind: output, shape index: {}, may-alias: {0,12}]  }
   0x1   :  { %s34_s22 = sshll.u32 %s2052_s21, 4  ;;  %s35_s22 = int_to_ptr.vmem [resolvable:$true] %s34_s22 }
   0x2   :  { %s2038_s23 = scalar_lea.vmem %s35_s22, 16  ;;  %s2042_s24 = scalar_lea.vmem %s35_s22, 32 }
   0x3   :  { %p2039_p0 = scmp.ne.s32.totalorder %s35_s22, %s2038_s23  ;;  %p2043_p1 = scmp.lt.s32.totalorder %s35_s22, %s35_s22 }
   0x4   :  { %p2044_p2 = scmp.lt.s32.totalorder %s2042_s24, %s2038_s23 }
   0x6   :  { %p2045_p3 = por %p2044_p2, %p2043_p1 }
   0x8   :  { %p2046_p4 = pnand %p2045_p3, %p2039_p0 }
   0xa   :  { %2049 = shalt.err (!%p2046_p4)
}
   0xb   :  { %37 = dma.hbm_to_vmem [thread:$0]  %s2472_s5, 16, %s35_s22, [#allocation3]  }
   0xc   :  { %2050 = dma.done.wait [#allocation3], 16  }
   0xd   :  { %2051 = vsyncadd [#allocation3], 4294967280  ;;  %vm58_vm0 = vcmask 261120   ;;  %v2131_v0 = vld [vmem:[%s2467_s0] sm:$0xff]  ;;  %v2136_v1 = vld [vmem:[%s2467_s0 + $0x8] sm:$0xff]  ;;  %v2053_v15 = vmov 0.0  }
   0xe   :  { %v59_v2 = vsel %vm58_vm0, %v2131_v0, 0.0  ;;  %v62_v3 = vsel %vm58_vm0, %v2136_v1, 0.0  ;;  %v1978_v14 = vld [vmem:[%s2470_s3 + $0x8] sm:$0xff]   ;;  %1783 = vmatprep.subr.bf16.mxu1 %v2053_v15  ;;  %vm2054_vm1 = vmmov 0   ;;  %v1979_v16 = vld [vmem:[%s2470_s3] sm:$0xff]   ;;  %1797 = vmatprep.subr.bf16.mxu0 %v2053_v15  ;;  %s2056_s18 = smov 120  }
   0xf   :  { %60 = vadd.xlane.f32.xlu0 %v59_v2  ;;  %1787 = vmatprep.mubr.msk.bf16.mxu1 %vm2054_vm1, %v2053_v15  ;;  %v1682_v25 = vld [vmem:[%s2468_s1] ss:$0 sm:$0xff]  ;;  %s2055_s1 = smov 112   ;;  %s2058_s19 = smov 96   ;;  %vm194_vm2 = vcmask 64512   ;;  %vm693_vm3 = vcmask 1043456  }
  0x10   :  { %1784 = vmatpush3.bf16.msra.mxu1 %v1978_v14  ;;  %1799 = vmatprep.mubr.msk.bf16.mxu0 %vm2054_vm1, %v2053_v15  ;;  %v1683_v29 = vld [vmem:[%s2469_s2] ss:$0 sm:$0xff]  ;;  %s2057_s2 = smov 104   ;;  %s2059_s20 = smov 64   ;;  %vm1628_vm4 = vcmask 523264  }
  0x11   :  { %1785 = vmatprep.subr.bf16.mxu1 %v2053_v15 }
  0x13   :  { %63 = vadd.xlane.f32.xlu0 %v62_v3 }
  0x14   :  { %1786 = vmatpush3.bf16.msra.mxu1 %v1979_v16 }
  0x15   :  { %1791 = vmatprep.subr.bf16.mxu1 %v2053_v15 }
  0x98   :  { %v61_v4 = vpop.xlane.xlu0 %60 }
  0x99   :  { %v66_v5 = vmul.f32 0.03125, %v61_v4 }
  0x9b   :  { %v68_v6 = vsub.f32 %v2131_v0, %v66_v5 }
  0x9c   :  { %v64_v7 = vpop.xlane.xlu0 %63 }
  0x9d   :  { %v67_v8 = vmul.f32 0.03125, %v64_v7  ;;  %v70_v9 = vmul.f32 %v68_v6, %v68_v6 }
  0x9f   :  { %v69_v10 = vsub.f32 %v2136_v1, %v67_v8  ;;  %v72_v11 = vsel %vm58_vm0, %v70_v9, 0.0 }
  0xa0   :  { %73 = vadd.xlane.f32.xlu1 %v72_v11 }
  0xa1   :  { %v71_v12 = vmul.f32 %v69_v10, %v69_v10 }
  0xa3   :  { %v75_v13 = vsel %vm58_vm0, %v71_v12, 0.0 }
  0xa4   :  { %76 = vadd.xlane.f32.xlu1 %v75_v13 }
 0x129   :  { %v74_v17 = vpop.xlane.xlu1 %73 }
 0x12a   :  { %v78_v18 = vmul.f32 0.03125, %v74_v17 }
 0x12c   :  { %v80_v19 = vadd.f32 1e-05, %v78_v18 }
 0x12d   :  { %v77_v20 = vpop.xlane.xlu1 %76 }
 0x12e   :  { %1986 = vrsqrt.f32 %v80_v19  ;;  %v79_v21 = vmul.f32 0.03125, %v77_v20 }
 0x130   :  { %v81_v22 = vadd.f32 1e-05, %v79_v21 }
 0x132   :  { %1988 = vrsqrt.f32 %v81_v22 }
 0x13b   :  { %v1987_v23 = vpop.eup %1986 }
 0x13c   :  { %v84_v24 = vmul.f32 %v1987_v23, %v68_v6 }
 0x13e   :  { %v92_v28 = vmul.f32 %v1682_v25, %v84_v24 }
 0x13f   :  { %v1989_v26 = vpop.eup %1988 }
 0x140   :  { %v85_v27 = vmul.f32 %v1989_v26, %v69_v10  ;;  %v100_v31 = vadd.f32 %v1683_v29, %v92_v28 }
 0x142   :  { %v93_v30 = vmul.f32 %v1682_v25, %v85_v27 }
 0x144   :  { %v101_v32 = vadd.f32 %v1683_v29, %v93_v30 }
 0x146   :  { %v102_v33 = vpack.c.bf16 %v101_v32, %v100_v31 }
 0x148   :  { %1788 = vmatmul.mubr.msk.bf16.vlgmr.msra.gmra.mxu1 %vm58_vm0, %v102_v33 }
 0x149   :  { %1793 = vmatprep.mubr.msk.bf16.mxu1 %vm2054_vm1, %v2053_v15 }
 0x208   :  { %v156_v34 = vpop.f32.mrf.mxu1 }
 0x209   :  { %v183_v40 = vpack.c.bf16 %v156_v34, %v156_v34 }
 0x20a   :  { %v1789_v35 = vpop.f32.mrf.mxu1 }
 0x20c   :  { %v159_v36 = vpop.f32.mrf.mxu1 }
 0x20d   :  { %v1968_v37 = vpack.i.bf16 %v159_v36, %v156_v34  ;;  %v2169_v39 = vpack.c.bf16 %v159_v36, %v159_v36 }
 0x20e   :  { %v1790_v38 = vpop.f32.mrf.mxu1 }
 0x20f   :  { %1969 = vrot.lane.b32.xlu1 %v1968_v37, %s2055_s1  ;;  %1964 = vrot.lane.b32.xlu0 %v1968_v37, %s2056_s18 }
 0x213   :  { %1974 = vrot.lane.b32.xlu1 %v1968_v37, %s2057_s2  ;;  %242 = vrot.lane.b32.xlu0 %v2169_v39, %s2058_s19 }
 0x217   :  { %192 = vrot.lane.b32.xlu1 %v183_v40, %s2058_s19 }
 0x281   :  { %v1970_v41 = vpop.permute.xlu1 %1969  ;;  %v1965_v42 = vpop.permute.xlu0 %1964 }
 0x282   :  { %v1967_v43 = vunpack.i.h.bf16 %v1965_v42  ;;  %v1966_v44 = vunpack.i.l.bf16 %v1965_v42  ;;  %v1972_v45 = vunpack.i.h.bf16 %v1970_v41  ;;  %v1971_v46 = vunpack.i.l.bf16 %v1970_v41 }
 0x284   :  { %v2174_v47 = vpack.c.bf16 %v1967_v43, %v1967_v43  ;;  %v2176_v48 = vpack.c.bf16 %v1966_v44, %v1966_v44  ;;  %v2183_v52 = vpack.c.bf16 %v1972_v45, %v1972_v45  ;;  %v2185_v53 = vpack.c.bf16 %v1971_v46, %v1971_v46 }
 0x285   :  { %v1975_v49 = vpop.permute.xlu1 %1974  ;;  %v243_v50 = vpop.permute.xlu0 %242 }
 0x286   :  { %291 = vrot.lane.b32.xlu1 %v2176_v48, %s2058_s19  ;;  %340 = vrot.lane.b32.xlu0 %v2174_v47, %s2058_s19  ;;  %v248_v51 = vsel %vm194_vm2, %v243_v50, 0  ;;  %v1977_v54 = vunpack.i.h.bf16 %v1975_v49  ;;  %v1976_v55 = vunpack.i.l.bf16 %v1975_v49 }
 0x287   :  { %1798 = vmatpush3.bf16.xpose.msra.mxu0 %v248_v51 }
 0x288   :  { %1809 = vmatprep.subr.bf16.mxu0 %v2053_v15  ;;  %v2193_v58 = vpack.c.bf16 %v1977_v54, %v1977_v54  ;;  %v2195_v59 = vpack.c.bf16 %v1976_v55, %v1976_v55 }
 0x289   :  { %v193_v56 = vpop.permute.xlu1 %192 }
 0x28a   :  { %v199_v57 = vsel %vm194_vm2, %v193_v56, 0  ;;  %389 = vrot.lane.b32.xlu1 %v2185_v53, %s2058_s19  ;;  %438 = vrot.lane.b32.xlu0 %v2183_v52, %s2058_s19 }
 0x28b   :  { %1792 = vmatpush3.bf16.xpose.msra.mxu1 %v199_v57 }
 0x28c   :  { %1803 = vmatprep.subr.bf16.mxu1 %v2053_v15 }
 0x28e   :  { %487 = vrot.lane.b32.xlu1 %v2195_v59, %s2058_s19  ;;  %536 = vrot.lane.b32.xlu0 %v2193_v58, %s2058_s19 }
 0x28f   :  { %1800 = vmatmul.mubr.msk.bf16.vlgmr.msra.gmra.mxu0 %vm194_vm2, %v2169_v39 }
 0x290   :  { %1811 = vmatprep.mubr.msk.bf16.mxu0 %vm2054_vm1, %v2053_v15 }
 0x292   :  { %1794 = vmatmul.mubr.msk.bf16.vlgmr.msra.gmra.mxu1 %vm194_vm2, %v183_v40  ;;  %688 = vrot.lane.b32.xlu1 %v183_v40, %s2059_s20 }
 0x293   :  { %1805 = vmatprep.mubr.msk.bf16.mxu1 %vm2054_vm1, %v2053_v15 }
 0x2f8   :  { %v292_v60 = vpop.permute.xlu1 %291  ;;  %v341_v61 = vpop.permute.xlu0 %340 }
 0x2f9   :  { %v297_v62 = vsel %vm194_vm2, %v292_v60, 0  ;;  %v346_v63 = vsel %vm194_vm2, %v341_v61, 0 }
 0x2fa   :  { %1804 = vmatpush3.bf16.xpose.msra.mxu1 %v297_v62  ;;  %1810 = vmatpush3.bf16.xpose.msra.mxu0 %v346_v63 }
 0x2fb   :  { %1815 = vmatprep.subr.bf16.mxu1 %v2053_v15  ;;  %1821 = vmatprep.subr.bf16.mxu0 %v2053_v15 }
 0x2fc   :  { %v390_v2 = vpop.permute.xlu1 %389  ;;  %v439_v3 = vpop.permute.xlu0 %438 }
 0x2fd   :  { %v395_v4 = vsel %vm194_vm2, %v390_v2, 0  ;;  %v444_v5 = vsel %vm194_vm2, %v439_v3, 0 }
 0x300   :  { %v488_v6 = vpop.permute.xlu1 %487  ;;  %v537_v7 = vpop.permute.xlu0 %536 }
 0x301   :  { %1806 = vmatmul.mubr.msk.bf16.vlgmr.msra.gmra.mxu1 %vm194_vm2, %v2176_v48  ;;  %1812 = vmatmul.mubr.msk.bf16.vlgmr.msra.gmra.mxu0 %vm194_vm2, %v2174_v47  ;;  %v493_v8 = vsel %vm194_vm2, %v488_v6, 0  ;;  %v542_v9 = vsel %vm194_vm2, %v537_v7, 0 }
 0x302   :  { %1816 = vmatpush3.bf16.xpose.msra.mxu1 %v395_v4  ;;  %1822 = vmatpush3.bf16.xpose.msra.mxu0 %v444_v5 }
 0x303   :  { %1817 = vmatprep.mubr.msk.bf16.mxu1 %vm2054_vm1, %v2053_v15  ;;  %1823 = vmatprep.mubr.msk.bf16.mxu0 %vm2054_vm1, %v2053_v15 }
 0x304   :  { %1827 = vmatprep.subr.bf16.mxu1 %v2053_v15  ;;  %1833 = vmatprep.subr.bf16.mxu0 %v2053_v15  ;;  %v689_v10 = vpop.permute.xlu1 %688 }
 0x305   :  { %v695_v11 = vsel %vm693_vm3, %v689_v10, 0 }
 0x309   :  { %1818 = vmatmul.mubr.msk.bf16.vlgmr.msra.gmra.mxu1 %vm194_vm2, %v2185_v53  ;;  %1824 = vmatmul.mubr.msk.bf16.vlgmr.msra.gmra.mxu0 %vm194_vm2, %v2183_v52 }
 0x30a   :  { %1828 = vmatpush3.bf16.xpose.msra.mxu1 %v493_v8  ;;  %1834 = vmatpush3.bf16.xpose.msra.mxu0 %v542_v9 }
 0x30b   :  { %1829 = vmatprep.mubr.msk.bf16.mxu1 %vm2054_vm1, %v2053_v15  ;;  %1835 = vmatprep.mubr.msk.bf16.mxu0 %vm2054_vm1, %v2053_v15 }
 0x30c   :  { %1839 = vmatprep.subr.bf16.mxu1 %v2053_v15  ;;  %1845 = vmatprep.subr.bf16.mxu0 %v2053_v15 }
 0x311   :  { %1830 = vmatmul.mubr.msk.bf16.vlgmr.msra.gmra.mxu1 %vm194_vm2, %v2195_v59  ;;  %1836 = vmatmul.mubr.msk.bf16.vlgmr.msra.gmra.mxu0 %vm194_vm2, %v2193_v58 }
 0x312   :  { %1840 = vmatpush3.bf16.msra.mxu1 %v695_v11  ;;  %1847 = vmatprep.mubr.msk.bf16.mxu0 %vm2054_vm1, %v2053_v15 }
 0x313   :  { %1841 = vmatprep.mubr.msk.bf16.mxu1 %vm2054_vm1, %v2053_v15  ;;  %1851 = vmatprep.subr.bf16.mxu1 %v2053_v15 }
 0x34f   :  { %v284_v12 = vpop.f32.mrf.mxu0 }
 0x350   :  { %v585_v13 = vmul.f32 0.17677669, %v284_v12 }
 0x351   :  { %v1801_v14 = vpop.f32.mrf.mxu0 }
 0x352   :  { %v595_v16 = vsel %vm194_vm2, %v585_v13, -inf  ;;  %v235_v17 = vpop.f32.mrf.mxu1 }
 0x353   :  { %596 = vmax.xlane.f32.xlu0 %v595_v16  ;;  %v584_v18 = vmul.f32 0.17677669, %v235_v17  ;;  %v287_v19 = vpop.f32.mrf.mxu0 }
 0x354   :  { %v1795_v20 = vpop.f32.mrf.mxu1 }
 0x355   :  { %v1802_v21 = vpop.f32.mrf.mxu0  ;;  %v592_v22 = vsel %vm194_vm2, %v584_v18, -inf }
 0x356   :  { %593 = vmax.xlane.f32.xlu1 %v592_v22  ;;  %v238_v23 = vpop.f32.mrf.mxu1 }
 0x358   :  { %v1796_v24 = vpop.f32.mrf.mxu1 }
 0x3c1   :  { %v333_v25 = vpop.f32.mrf.mxu1  ;;  %v382_v26 = vpop.f32.mrf.mxu0 }
 0x3c2   :  { %v586_v27 = vmul.f32 0.17677669, %v333_v25  ;;  %v587_v30 = vmul.f32 0.17677669, %v382_v26 }
 0x3c3   :  { %v1807_v28 = vpop.f32.mrf.mxu1  ;;  %v1813_v29 = vpop.f32.mrf.mxu0 }
 0x3c4   :  { %v598_v31 = vsel %vm194_vm2, %v586_v27, -inf  ;;  %v601_v36 = vsel %vm194_vm2, %v587_v30, -inf }
 0x3c5   :  { %v385_v32 = vpop.f32.mrf.mxu0  ;;  %599 = vmax.xlane.f32.xlu0 %v598_v31  ;;  %v336_v33 = vpop.f32.mrf.mxu1 }
 0x3c7   :  { %v1808_v34 = vpop.f32.mrf.mxu1  ;;  %v1814_v35 = vpop.f32.mrf.mxu0 }
 0x3c9   :  { %v480_v37 = vpop.f32.mrf.mxu0  ;;  %602 = vmax.xlane.f32.xlu0 %v601_v36  ;;  %v431_v38 = vpop.f32.mrf.mxu1 }
 0x3ca   :  { %v2252_v40 = vmul.f32 0.17677669, %v480_v37  ;;  %v588_v41 = vmul.f32 0.17677669, %v431_v38 }
 0x3cb   :  { %v1819_v42 = vpop.f32.mrf.mxu1  ;;  %v1825_v43 = vpop.f32.mrf.mxu0 }
 0x3cc   :  { %v607_v44 = vsel %vm194_vm2, %v2252_v40, -inf  ;;  %v604_v45 = vsel %vm194_vm2, %v588_v41, -inf }
 0x3cd   :  { %v483_v46 = vpop.f32.mrf.mxu0  ;;  %608 = vmax.xlane.f32.xlu0 %v607_v44  ;;  %605 = vmax.xlane.f32.xlu1 %v604_v45  ;;  %v434_v49 = vpop.f32.mrf.mxu1 }
 0x3cf   :  { %v1820_v50 = vpop.f32.mrf.mxu1  ;;  %v1826_v51 = vpop.f32.mrf.mxu0 }
 0x3d1   :  { %v529_v54 = vpop.f32.mrf.mxu1  ;;  %v578_v55 = vpop.f32.mrf.mxu0 }
 0x3d2   :  { %v590_v56 = vmul.f32 0.17677669, %v529_v54  ;;  %v2257_v57 = vmul.f32 0.17677669, %v578_v55 }
 0x3d3   :  { %v1831_v60 = vpop.f32.mrf.mxu1  ;;  %v1837_v61 = vpop.f32.mrf.mxu0 }
 0x3d4   :  { %v613_v62 = vsel %vm194_vm2, %v2257_v57, -inf  ;;  %v610_v63 = vsel %vm194_vm2, %v590_v56, -inf }
 0x3d5   :  { %v581_v2 = vpop.f32.mrf.mxu0  ;;  %614 = vmax.xlane.f32.xlu0 %v613_v62  ;;  %611 = vmax.xlane.f32.xlu1 %v610_v63  ;;  %v532_v3 = vpop.f32.mrf.mxu1 }
 0x3d7   :  { %v1832_v4 = vpop.f32.mrf.mxu1  ;;  %v1838_v5 = vpop.f32.mrf.mxu0 }
 0x3dc   :  { %v597_v6 = vpop.xlane.xlu0 %596 }
 0x3dd   :  { %v617_v7 = vsub.f32 %v585_v13, %v597_v6 }
 0x3df   :  { %v594_v8 = vpop.xlane.xlu1 %593  ;;  %v626_v9 = vmul.f32 1.442695, %v617_v7 }
 0x3e0   :  { %v616_v10 = vsub.f32 %v584_v18, %v594_v8 }
 0x3e1   :  { %1990 = vpow2.f32 %v626_v9 }
 0x3e2   :  { %v624_v11 = vmul.f32 1.442695, %v616_v10 }
 0x3e4   :  { %1992 = vpow2.f32 %v624_v11 }
 0x3e6   :  { %785 = vrot.lane.b32.xlu1 %v2176_v48, %s2059_s20 }
 0x3ea   :  { %833 = vrot.lane.b32.xlu1 %v2174_v47, %s2059_s20 }
 0x3eb   :  { %737 = vrot.lane.b32.xlu0 %v2169_v39, %s2059_s20 }
 0x3ee   :  { %v1991_v12 = vpop.eup %1990 }
 0x3ef   :  { %v643_v14 = vsel %vm194_vm2, %v1991_v12, 0.0 }
 0x3f1   :  { %v2269_v16 = vpop.eup %1992 }
 0x3f2   :  { %v640_v47 = vsel %vm194_vm2, %v2269_v16, 0.0 }
 0x40a   :  { %644 = vadd.xlane.f32.xlu0 %v643_v14 }
 0x40e   :  { %641 = vadd.xlane.f32.xlu1 %v640_v47 }
 0x41f   :  { %881 = vrot.lane.b32.xlu1 %v2185_v53, %s2059_s20 }
 0x44e   :  { %v600_v39 = vpop.xlane.xlu0 %599 }
 0x44f   :  { %v618_v48 = vsub.f32 %v586_v27, %v600_v39 }
 0x451   :  { %v628_v13 = vmul.f32 1.442695, %v618_v48 }
 0x452   :  { %v603_v17 = vpop.xlane.xlu0 %602 }
 0x453   :  { %1994 = vpow2.f32 %v628_v13  ;;  %v619_v18 = vsub.f32 %v587_v30, %v603_v17 }
 0x455   :  { %v630_v19 = vmul.f32 1.442695, %v619_v18  ;;  %v1073_v18 = vld [vmem:[%s2471_s4] sm:$0xf] }
 0x456   :  { %v606_v20 = vpop.xlane.xlu1 %605  ;;  %v609_v23 = vpop.xlane.xlu0 %608 }
 0x457   :  { %1996 = vpow2.f32 %v630_v19  ;;  %v620_v21 = vsub.f32 %v588_v41, %v606_v20  ;;  %v621_v37 = vsub.f32 %v2252_v40, %v609_v23  ;;  %v1089_v20 = vsel %vm693_vm3, %v1073_v18, 0 }
 0x459   :  { %v632_v22 = vmul.f32 1.442695, %v620_v21  ;;  %v634_v38 = vmul.f32 1.442695, %v621_v37 }
 0x45b   :  { %1998 = vpow2.f32 %v632_v22 }
 0x45e   :  { %v615_v24 = vpop.xlane.xlu0 %614  ;;  %v612_v25 = vpop.xlane.xlu1 %611 }
 0x45f   :  { %v622_v26 = vsub.f32 %v590_v56, %v612_v25  ;;  %v623_v41 = vsub.f32 %v2257_v57, %v615_v24 }
 0x460   :  { %v2275_v28 = vpop.eup %1994 }
 0x461   :  { %v636_v29 = vmul.f32 1.442695, %v622_v26  ;;  %v646_v53 = vsel %vm194_vm2, %v2275_v28, 0.0  ;;  %v638_v42 = vmul.f32 1.442695, %v623_v41 }
 0x462   :  { %v738_v27 = vpop.permute.xlu0 %737  ;;  %647 = vadd.xlane.f32.xlu1 %v646_v53  ;;  %v786_v43 = vpop.permute.xlu1 %785 }
 0x463   :  { %v743_v30 = vsel %vm693_vm3, %v738_v27, 0  ;;  %2000 = vpow2.f32 %v636_v29  ;;  %v791_v61 = vsel %vm693_vm3, %v786_v43, 0 }
 0x464   :  { %v2280_v31 = vpop.eup %1996  ;;  %1846 = vmatpush3.bf16.msra.mxu0 %v743_v30  ;;  %2002 = vpow2.f32 %v634_v38 }
 0x465   :  { %v649_v32 = vsel %vm194_vm2, %v2280_v31, 0.0  ;;  %1857 = vmatprep.subr.bf16.mxu0 %v2053_v15  ;;  %2004 = vpow2.f32 %v638_v42 }
 0x466   :  { %650 = vadd.xlane.f32.xlu0 %v649_v32  ;;  %v834_v44 = vpop.permute.xlu1 %833 }
 0x467   :  { %v839_v56 = vsel %vm693_vm3, %v834_v44, 0  ;;  %v1075_v44 = vld [vmem:[%s2471_s4 + $0x8] sm:$0xf] }
 0x468   :  { %v2285_v33 = vpop.eup %1998 }
 0x469   :  { %v652_v34 = vsel %vm194_vm2, %v2285_v33, 0.0 }
 0x46a   :  { %653 = vadd.xlane.f32.xlu1 %v652_v34 }
 0x470   :  { %v2289_v35 = vpop.eup %2000 }
 0x471   :  { %v658_v36 = vsel %vm194_vm2, %v2289_v35, 0.0  ;;  %v2299_v46 = vpop.eup %2002 }
 0x472   :  { %659 = vadd.xlane.f32.xlu1 %v658_v36  ;;  %v2303_v40 = vpop.eup %2004 }
 0x47c   :  { %929 = vrot.lane.b32.xlu0 %v2183_v52, %s2059_s20  ;;  %v655_v52 = vsel %vm194_vm2, %v2299_v46, 0.0 }
 0x483   :  { %977 = vrot.lane.b32.xlu1 %v2195_v59, %s2059_s20  ;;  %v661_v59 = vsel %vm194_vm2, %v2303_v40, 0.0 }
 0x493   :  { %v645_v45 = vpop.xlane.xlu0 %644 }
 0x494   :  { %2006 = vrcp.f32 %v645_v45 }
 0x497   :  { %v642_v49 = vpop.xlane.xlu1 %641 }
 0x498   :  { %2008 = vrcp.f32 %v642_v49  ;;  %v1267_v49 = vsel %vm693_vm3, %v1075_v44, 0  ;;  %v1711_v44 = vld [vmem:[#allocation2] ss:$0 sm:$0xff] }
 0x49b   :  { %656 = vadd.xlane.f32.xlu0 %v655_v52  ;;  %v882_v62 = vpop.permute.xlu1 %881 }
 0x49c   :  { %v887_v9 = vsel %vm693_vm3, %v882_v62, 0 }
 0x49f   :  { %662 = vadd.xlane.f32.xlu0 %v661_v59 }
 0x4a1   :  { %v2007_v50 = vpop.eup %2006 }
 0x4a2   :  { %v673_v51 = vmul.f32 %v2007_v50, %v1991_v12 }
 0x4a4   :  { %v681_v54 = vpack.c.bf16 %v673_v51, %v673_v51 }
 0x4a5   :  { %v2009_v55 = vpop.eup %2008 }
 0x4a6   :  { %1848 = vmatmul.mubr.msk.bf16.vlgmr.msra.gmra.mxu0 %vm194_vm2, %v681_v54  ;;  %v672_v57 = vmul.f32 %v2009_v55, %v2269_v16  ;;  %v1076_v55 = vld [vmem:[%s2471_s4 + $0xc] sm:$0xf] }
 0x4a7   :  { %1858 = vmatpush3.bf16.msra.mxu0 %v839_v56  ;;  %1859 = vmatprep.mubr.msk.bf16.mxu0 %vm2054_vm1, %v2053_v15  ;;  %v1356_v62 = vsel %vm693_vm3, %v1076_v55, 0 }
 0x4a8   :  { %v680_v60 = vpack.c.bf16 %v672_v57, %v672_v57  ;;  %1869 = vmatprep.subr.bf16.mxu0 %v2053_v15 }
 0x4aa   :  { %1842 = vmatmul.mubr.msk.bf16.vlgmr.msra.gmra.mxu1 %vm194_vm2, %v680_v60 }
 0x4ab   :  { %1852 = vmatpush3.bf16.msra.mxu1 %v791_v61  ;;  %1853 = vmatprep.mubr.msk.bf16.mxu1 %vm2054_vm1, %v2053_v15 }
 0x4ac   :  { %1863 = vmatprep.subr.bf16.mxu1 %v2053_v15 }
 0x4b5   :  { %1025 = vrot.lane.b32.xlu0 %v2193_v58, %s2059_s20 }
 0x4eb   :  { %v648_v63 = vpop.xlane.xlu1 %647 }
 0x4ec   :  { %2010 = vrcp.f32 %v648_v63 }
 0x4ef   :  { %v651_v2 = vpop.xlane.xlu0 %650 }
 0x4f0   :  { %2012 = vrcp.f32 %v651_v2 }
 0x4f3   :  { %v654_v3 = vpop.xlane.xlu1 %653  ;;  %v930_v10 = vpop.permute.xlu0 %929 }
 0x4f4   :  { %2014 = vrcp.f32 %v654_v3  ;;  %v935_v14 = vsel %vm693_vm3, %v930_v10, 0 }
 0x4f9   :  { %v2011_v4 = vpop.eup %2010 }
 0x4fa   :  { %v674_v5 = vmul.f32 %v2011_v4, %v2275_v28 }
 0x4fb   :  { %v660_v6 = vpop.xlane.xlu1 %659 }
 0x4fc   :  { %v682_v7 = vpack.c.bf16 %v674_v5, %v674_v5  ;;  %2016 = vrcp.f32 %v660_v6 }
 0x4fd   :  { %v2013_v8 = vpop.eup %2012 }
 0x4fe   :  { %1854 = vmatmul.mubr.msk.bf16.vlgmr.msra.gmra.mxu1 %vm194_vm2, %v682_v7  ;;  %v675_v58 = vmul.f32 %v2013_v8, %v2280_v31  ;;  %v1074_v31 = vld [vmem:[%s2471_s4 + $0x4] sm:$0xf] }
 0x4ff   :  { %1864 = vmatpush3.bf16.msra.mxu1 %v887_v9  ;;  %1865 = vmatprep.mubr.msk.bf16.mxu1 %vm2054_vm1, %v2053_v15  ;;  %v978_v47 = vpop.permute.xlu1 %977  ;;  %v1178_v34 = vsel %vm693_vm3, %v1074_v31, 0 }
 0x500   :  { %v683_v11 = vpack.c.bf16 %v675_v58, %v675_v58  ;;  %1875 = vmatprep.subr.bf16.mxu1 %v2053_v15  ;;  %v983_v48 = vsel %vm693_vm3, %v978_v47, 0 }
 0x501   :  { %v2015_v12 = vpop.eup %2014 }
 0x502   :  { %1860 = vmatmul.mubr.msk.bf16.vlgmr.msra.gmra.mxu0 %vm194_vm2, %v683_v11  ;;  %v676_v16 = vmul.f32 %v2015_v12, %v2285_v33 }
 0x503   :  { %1870 = vmatpush3.bf16.msra.mxu0 %v935_v14  ;;  %1871 = vmatprep.mubr.msk.bf16.mxu0 %vm2054_vm1, %v2053_v15 }
 0x504   :  { %1881 = vmatprep.subr.bf16.mxu0 %v2053_v15  ;;  %v684_v39 = vpack.c.bf16 %v676_v16, %v676_v16 }
 0x506   :  { %1866 = vmatmul.mubr.msk.bf16.vlgmr.msra.gmra.mxu1 %vm194_vm2, %v684_v39 }
 0x507   :  { %1876 = vmatpush3.bf16.msra.mxu1 %v983_v48  ;;  %1877 = vmatprep.mubr.msk.bf16.mxu1 %vm2054_vm1, %v2053_v15 }
 0x508   :  { %1887 = vmatprep.subr.bf16.mxu1 %v2053_v15 }
 0x509   :  { %v2017_v13 = vpop.eup %2016 }
 0x50a   :  { %v678_v17 = vmul.f32 %v2017_v13, %v2289_v35 }
 0x50c   :  { %v686_v19 = vpack.c.bf16 %v678_v17, %v678_v17 }
 0x50e   :  { %1878 = vmatmul.mubr.msk.bf16.vlgmr.msra.gmra.mxu1 %vm194_vm2, %v686_v19 }
 0x50f   :  { %1888 = vmatpush3.bf16.msra.mxu1 %v1089_v20  ;;  %1889 = vmatprep.mubr.msk.bf16.mxu1 %vm2054_vm1, %v2053_v15 }
 0x510   :  { %1899 = vmatprep.subr.bf16.mxu1 %v2053_v15 }
 0x524   :  { %v657_v21 = vpop.xlane.xlu0 %656 }
 0x525   :  { %2018 = vrcp.f32 %v657_v21 }
 0x528   :  { %v663_v22 = vpop.xlane.xlu0 %662 }
 0x529   :  { %2020 = vrcp.f32 %v663_v22 }
 0x52c   :  { %v1026_v25 = vpop.permute.xlu0 %1025 }
 0x52d   :  { %v1031_v29 = vsel %vm693_vm3, %v1026_v25, 0 }
 0x532   :  { %v2019_v23 = vpop.eup %2018 }
 0x533   :  { %v677_v24 = vmul.f32 %v2019_v23, %v2299_v46 }
 0x535   :  { %v685_v26 = vpack.c.bf16 %v677_v24, %v677_v24 }
 0x536   :  { %v2021_v28 = vpop.eup %2020 }
 0x537   :  { %1872 = vmatmul.mubr.msk.bf16.vlgmr.msra.gmra.mxu0 %vm194_vm2, %v685_v26  ;;  %v679_v53 = vmul.f32 %v2021_v28, %v2303_v40 }
 0x538   :  { %1882 = vmatpush3.bf16.msra.mxu0 %v1031_v29  ;;  %1883 = vmatprep.mubr.msk.bf16.mxu0 %vm2054_vm1, %v2053_v15 }
 0x539   :  { %1893 = vmatprep.subr.bf16.mxu0 %v2053_v15  ;;  %v687_v27 = vpack.c.bf16 %v679_v53, %v679_v53 }
 0x53f   :  { %1884 = vmatmul.mubr.msk.bf16.vlgmr.msra.gmra.mxu0 %vm194_vm2, %v687_v27 }
 0x540   :  { %1894 = vmatpush3.bf16.msra.mxu0 %v1089_v20  ;;  %1895 = vmatprep.mubr.msk.bf16.mxu0 %vm2054_vm1, %v2053_v15 }
 0x541   :  { %1905 = vmatprep.subr.bf16.mxu0 %v2053_v15 }
 0x566   :  { %v779_v30 = vpop.f32.mrf.mxu0 }
 0x567   :  { %v1078_v32 = vpack.c.bf16 %v779_v30, %v779_v30 }
 0x568   :  { %v1849_v33 = vpop.f32.mrf.mxu0 }
 0x569   :  { %1896 = vmatmul.mubr.msk.bf16.vlgmr.msra.gmra.mxu0 %vm194_vm2, %v1078_v32 }
 0x56a   :  { %v731_v35 = vpop.f32.mrf.mxu1  ;;  %v782_v36 = vpop.f32.mrf.mxu0  ;;  %1906 = vmatpush3.bf16.msra.mxu0 %v1178_v34  ;;  %1907 = vmatprep.mubr.msk.bf16.mxu0 %vm2054_vm1, %v2053_v15 }
 0x56b   :  { %v1077_v37 = vpack.c.bf16 %v731_v35, %v731_v35  ;;  %1917 = vmatprep.subr.bf16.mxu0 %v2053_v15 }
 0x56c   :  { %v1843_v38 = vpop.f32.mrf.mxu1  ;;  %v1850_v41 = vpop.f32.mrf.mxu0 }
 0x56d   :  { %1890 = vmatmul.mubr.msk.bf16.vlgmr.msra.gmra.mxu1 %vm194_vm2, %v1077_v37 }
 0x56e   :  { %v734_v42 = vpop.f32.mrf.mxu1  ;;  %1900 = vmatpush3.bf16.msra.mxu1 %v1178_v34  ;;  %1901 = vmatprep.mubr.msk.bf16.mxu1 %vm2054_vm1, %v2053_v15 }
 0x56f   :  { %1911 = vmatprep.subr.bf16.mxu1 %v2053_v15 }
 0x570   :  { %v1844_v43 = vpop.f32.mrf.mxu1 }
 0x5be   :  { %v827_v45 = vpop.f32.mrf.mxu1 }
 0x5bf   :  { %v1079_v46 = vpack.c.bf16 %v827_v45, %v827_v45 }
 0x5c0   :  { %v1855_v52 = vpop.f32.mrf.mxu1 }
 0x5c1   :  { %1902 = vmatmul.mubr.msk.bf16.vlgmr.msra.gmra.mxu1 %vm194_vm2, %v1079_v46 }
 0x5c2   :  { %v830_v40 = vpop.f32.mrf.mxu1  ;;  %v875_v59 = vpop.f32.mrf.mxu0  ;;  %1912 = vmatpush3.bf16.msra.mxu1 %v1267_v49  ;;  %1913 = vmatprep.mubr.msk.bf16.mxu1 %vm2054_vm1, %v2053_v15 }
 0x5c3   :  { %v1080_v50 = vpack.c.bf16 %v875_v59, %v875_v59  ;;  %1923 = vmatprep.subr.bf16.mxu1 %v2053_v15 }
 0x5c4   :  { %v1856_v51 = vpop.f32.mrf.mxu1  ;;  %v1861_v54 = vpop.f32.mrf.mxu0 }
 0x5c5   :  { %1908 = vmatmul.mubr.msk.bf16.vlgmr.msra.gmra.mxu0 %vm194_vm2, %v1080_v50 }
 0x5c6   :  { %v878_v56 = vpop.f32.mrf.mxu0  ;;  %1918 = vmatpush3.bf16.msra.mxu0 %v1267_v49  ;;  %1919 = vmatprep.mubr.msk.bf16.mxu0 %vm2054_vm1, %v2053_v15  ;;  %v923_v57 = vpop.f32.mrf.mxu1 }
 0x5c7   :  { %1929 = vmatprep.subr.bf16.mxu0 %v2053_v15  ;;  %v1081_v60 = vpack.c.bf16 %v923_v57, %v923_v57 }
 0x5c8   :  { %v1862_v61 = vpop.f32.mrf.mxu0  ;;  %v1867_v63 = vpop.f32.mrf.mxu1 }
 0x5c9   :  { %1914 = vmatmul.mubr.msk.bf16.vlgmr.msra.gmra.mxu1 %vm194_vm2, %v1081_v60 }
 0x5ca   :  { %v926_v2 = vpop.f32.mrf.mxu1  ;;  %1924 = vmatpush3.bf16.msra.mxu1 %v1356_v62  ;;  %1925 = vmatprep.mubr.msk.bf16.mxu1 %vm2054_vm1, %v2053_v15 }
 0x5cb   :  { %1935 = vmatprep.subr.bf16.mxu1 %v2053_v15 }
 0x5cc   :  { %v1868_v3 = vpop.f32.mrf.mxu1 }
 0x5ce   :  { %v1019_v4 = vpop.f32.mrf.mxu1 }
 0x5cf   :  { %v1083_v5 = vpack.c.bf16 %v1019_v4, %v1019_v4 }
 0x5d0   :  { %v1879_v6 = vpop.f32.mrf.mxu1 }
 0x5d1   :  { %1926 = vmatmul.mubr.msk.bf16.vlgmr.msra.gmra.mxu1 %vm194_vm2, %v1083_v5 }
 0x5d2   :  { %v1022_v7 = vpop.f32.mrf.mxu1  ;;  %1939 = vmatprep.mubr.msk.bf16.mxu1 %vm2054_vm1, %v2053_v15 }
 0x5d4   :  { %v1880_v8 = vpop.f32.mrf.mxu1 }
 0x5f7   :  { %v971_v9 = vpop.f32.mrf.mxu0 }
 0x5f8   :  { %v1082_v58 = vpack.c.bf16 %v971_v9, %v971_v9 }
 0x5f9   :  { %v1873_v10 = vpop.f32.mrf.mxu0 }
 0x5fa   :  { %1920 = vmatmul.mubr.msk.bf16.vlgmr.msra.gmra.mxu0 %vm194_vm2, %v1082_v58 }
 0x5fb   :  { %v974_v11 = vpop.f32.mrf.mxu0  ;;  %1930 = vmatpush3.bf16.msra.mxu0 %v1356_v62  ;;  %1931 = vmatprep.mubr.msk.bf16.mxu0 %vm2054_vm1, %v2053_v15 }
 0x5fc   :  { %1943 = vmatprep.subr.bf16.mxu0 %v2053_v15 }
 0x5fd   :  { %v1874_v12 = vpop.f32.mrf.mxu0 }
 0x5ff   :  { %v1067_v14 = vpop.f32.mrf.mxu0 }
 0x600   :  { %v1084_v16 = vpack.c.bf16 %v1067_v14, %v1067_v14 }
 0x601   :  { %v1885_v47 = vpop.f32.mrf.mxu0 }
 0x602   :  { %1932 = vmatmul.mubr.msk.bf16.vlgmr.msra.gmra.mxu0 %vm194_vm2, %v1084_v16 }
 0x603   :  { %v1070_v39 = vpop.f32.mrf.mxu0  ;;  %1951 = vmatprep.mubr.msk.bf16.mxu0 %vm2054_vm1, %v2053_v15 }
 0x605   :  { %v1886_v48 = vpop.f32.mrf.mxu0 }
 0x629   :  { %v1168_v13 = vpop.f32.mrf.mxu0 }
 0x62a   :  { %v1448_v57 = vsel %vm58_vm0, %v1168_v13, 0.0  ;;  %v1980_v13 = vld [vmem:[%s2475_s8 + $0x8] sm:$0xff]  }
 0x62b   :  { %v1897_v17 = vpop.f32.mrf.mxu0  ;;  %1936 = vmatpush3.bf16.msra.mxu1 %v1980_v13 }
 0x62c   :  { %v1981_v17 = vld [vmem:[%s2475_s8] sm:$0xff]   ;;  %1937 = vmatprep.subr.bf16.mxu1 %v2053_v15 }
 0x62d   :  { %v1125_v18 = vpop.f32.mrf.mxu1  ;;  %v1171_v19 = vpop.f32.mrf.mxu0 }
 0x62e   :  { %v1441_v35 = vsel %vm58_vm0, %v1125_v18, 0.0 }
 0x62f   :  { %v1891_v20 = vpop.f32.mrf.mxu1  ;;  %v1898_v21 = vpop.f32.mrf.mxu0  ;;  %1938 = vmatpush3.bf16.msra.mxu1 %v1981_v17 }
 0x631   :  { %v1128_v22 = vpop.f32.mrf.mxu1 }
 0x633   :  { %v1892_v23 = vpop.f32.mrf.mxu1 }
 0x681   :  { %v1214_v24 = vpop.f32.mrf.mxu1 }
 0x682   :  { %v1442_v33 = vsel %vm58_vm0, %v1214_v24, 0.0 }
 0x683   :  { %v1903_v25 = vpop.f32.mrf.mxu1  ;;  %v1443_v37 = vadd.f32 %v1442_v33, %v1441_v35  ;;  %v1983_v35 = vld [vmem:[%s2477_s10 + $0x10] sm:$0xff]  }
 0x685   :  { %v1217_v26 = vpop.f32.mrf.mxu1  ;;  %v1257_v28 = vpop.f32.mrf.mxu0 }
 0x686   :  { %v1449_v55 = vsel %vm58_vm0, %v1257_v28, 0.0  ;;  %v1712_v26 = vld [vmem:[%s2473_s6] ss:$0 sm:$0xff] }
 0x687   :  { %v1904_v29 = vpop.f32.mrf.mxu1  ;;  %v1909_v53 = vpop.f32.mrf.mxu0  ;;  %v1450_v61 = vadd.f32 %v1449_v55, %v1448_v57 }
 0x689   :  { %v1260_v27 = vpop.f32.mrf.mxu0  ;;  %v1303_v30 = vpop.f32.mrf.mxu1 }
 0x68a   :  { %v1444_v36 = vsel %vm58_vm0, %v1303_v30, 0.0  ;;  %v1713_v27 = vld [vmem:[%s2474_s7] ss:$0 sm:$0xff] }
 0x68b   :  { %v1910_v31 = vpop.f32.mrf.mxu0  ;;  %v1915_v32 = vpop.f32.mrf.mxu1  ;;  %v1445_v41 = vadd.f32 %v1444_v36, %v1443_v37  ;;  %v1984_v36 = vld [vmem:[%s2477_s10 + $0x8] sm:$0xff]   ;;  %v1985_v37 = vld [vmem:[%s2477_s10] sm:$0xff]  }
 0x68d   :  { %v1306_v34 = vpop.f32.mrf.mxu1 }
 0x68e   :  { %v1982_v34 = vld [vmem:[%s2477_s10 + $0x18] sm:$0xff]  }
 0x68f   :  { %v1916_v38 = vpop.f32.mrf.mxu1  ;;  %1944 = vmatpush3.bf16.msra.mxu0 %v1982_v34 }
 0x690   :  { %1945 = vmatprep.subr.bf16.mxu0 %v2053_v15  ;;  %v1714_v38 = vld [vmem:[%s2476_s9] ss:$0 sm:$0xff] }
 0x691   :  { %v1392_v42 = vpop.f32.mrf.mxu1 }
 0x692   :  { %v1446_v43 = vsel %vm58_vm0, %v1392_v42, 0.0 }
 0x693   :  { %v1447_v45 = vadd.f32 %v1446_v43, %v1445_v41  ;;  %v1927_v46 = vpop.f32.mrf.mxu1  ;;  %1946 = vmatpush3.bf16.msra.mxu0 %v1983_v35 }
 0x694   :  { %1947 = vmatprep.subr.bf16.mxu0 %v2053_v15 }
 0x695   :  { %v1462_v49 = vadd.f32 %v1711_v44, %v1447_v45  ;;  %v1395_v52 = vpop.f32.mrf.mxu1 }
 0x697   :  { %v1928_v40 = vpop.f32.mrf.mxu1  ;;  %v2405_v59 = vadd.f32 %v1462_v49, %v2131_v0  ;;  %1948 = vmatpush3.bf16.msra.mxu0 %v1984_v36 }
 0x698   :  { %1949 = vmatprep.subr.bf16.mxu0 %v2053_v15 }
 0x699   :  { %v1468_v50 = vsel %vm58_vm0, %v2405_v59, 0.0 }
 0x69a   :  { %1469 = vadd.xlane.f32.xlu1 %v1468_v50 }
 0x69b   :  { %1950 = vmatpush3.bf16.msra.mxu0 %v1985_v37 }
 0x6ba   :  { %v1346_v51 = vpop.f32.mrf.mxu0 }
 0x6bb   :  { %v1451_v60 = vsel %vm58_vm0, %v1346_v51, 0.0 }
 0x6bc   :  { %v1921_v54 = vpop.f32.mrf.mxu0  ;;  %v1452_v63 = vadd.f32 %v1451_v60, %v1450_v61  ;;  %v1718_v61 = vld [vmem:[%s2478_s11] ss:$0 sm:$0xff] }
 0x6be   :  { %v1349_v56 = vpop.f32.mrf.mxu0 }
 0x6c0   :  { %v1922_v62 = vpop.f32.mrf.mxu0 }
 0x6c2   :  { %v1435_v2 = vpop.f32.mrf.mxu0 }
 0x6c3   :  { %v1453_v0 = vsel %vm58_vm0, %v1435_v2, 0.0 }
 0x6c4   :  { %v1454_v3 = vadd.f32 %v1453_v0, %v1452_v63  ;;  %v1933_v4 = vpop.f32.mrf.mxu0 }
 0x6c6   :  { %v1463_v5 = vadd.f32 %v1711_v44, %v1454_v3  ;;  %v1438_v6 = vpop.f32.mrf.mxu0 }
 0x6c8   :  { %v1934_v7 = vpop.f32.mrf.mxu0  ;;  %v2414_v8 = vadd.f32 %v1463_v5, %v2136_v1 }
 0x6ca   :  { %v1471_v9 = vsel %vm58_vm0, %v2414_v8, 0.0 }
 0x6cb   :  { %1472 = vadd.xlane.f32.xlu0 %v1471_v9 }
 0x723   :  { %v1470_v58 = vpop.xlane.xlu1 %1469 }
 0x724   :  { %v1474_v10 = vmul.f32 0.03125, %v1470_v58 }
 0x726   :  { %v1476_v11 = vsub.f32 %v2405_v59, %v1474_v10 }
 0x728   :  { %v1478_v12 = vmul.f32 %v1476_v11, %v1476_v11 }
 0x72a   :  { %v1480_v14 = vsel %vm58_vm0, %v1478_v12, 0.0 }
 0x72b   :  { %1481 = vadd.xlane.f32.xlu0 %v1480_v14 }
 0x754   :  { %v1473_v16 = vpop.xlane.xlu0 %1472 }
 0x755   :  { %v1475_v47 = vmul.f32 0.03125, %v1473_v16 }
 0x757   :  { %v1477_v39 = vsub.f32 %v2414_v8, %v1475_v47 }
 0x759   :  { %v1479_v48 = vmul.f32 %v1477_v39, %v1477_v39 }
 0x75b   :  { %v1483_v1 = vsel %vm58_vm0, %v1479_v48, 0.0 }
 0x75c   :  { %1484 = vadd.xlane.f32.xlu0 %v1483_v1 }
 0x7b4   :  { %v1482_v18 = vpop.xlane.xlu0 %1481 }
 0x7b5   :  { %v1486_v19 = vmul.f32 0.03125, %v1482_v18 }
 0x7b7   :  { %v1488_v20 = vadd.f32 1e-05, %v1486_v19 }
 0x7b9   :  { %2022 = vrsqrt.f32 %v1488_v20 }
 0x7c6   :  { %v2023_v24 = vpop.eup %2022 }
 0x7c7   :  { %v1492_v25 = vmul.f32 %v2023_v24, %v1476_v11 }
 0x7c9   :  { %v1500_v53 = vmul.f32 %v1712_v26, %v1492_v25 }
 0x7cb   :  { %v1508_v31 = vadd.f32 %v1713_v27, %v1500_v53 }
 0x7e5   :  { %v1485_v21 = vpop.xlane.xlu0 %1484 }
 0x7e6   :  { %v1487_v22 = vmul.f32 0.03125, %v1485_v21 }
 0x7e8   :  { %v1489_v23 = vadd.f32 1e-05, %v1487_v22 }
 0x7ea   :  { %2024 = vrsqrt.f32 %v1489_v23 }
 0x7f7   :  { %v2025_v28 = vpop.eup %2024 }
 0x7f8   :  { %v1493_v29 = vmul.f32 %v2025_v28, %v1477_v39 }
 0x7fa   :  { %v1501_v30 = vmul.f32 %v1712_v26, %v1493_v29 }
 0x7fc   :  { %v1509_v32 = vadd.f32 %v1713_v27, %v1501_v30 }
 0x7fe   :  { %v1510_v33 = vpack.c.bf16 %v1509_v32, %v1508_v31 }
 0x800   :  { %1940 = vmatmul.mubr.msk.bf16.vlgmr.msra.gmra.mxu1 %vm58_vm0, %v1510_v33 }
 0x8c0   :  { %v1571_v41 = vpop.f32.mrf.mxu1 }
 0x8c1   :  { %v1572_v42 = vadd.f32 %v1714_v38, %v1571_v41 }
 0x8c2   :  { %v1941_v43 = vpop.f32.mrf.mxu1 }
 0x8c3   :  { %v1580_v44 = vmul.f32 0.70710677, %v1572_v42  ;;  %v1578_v51 = vmul.f32 0.5, %v1572_v42 }
 0x8c4   :  { %v1574_v45 = vpop.f32.mrf.mxu1 }
 0x8c5   :  { %2026 = verf.f32 %v1580_v44  ;;  %v1575_v46 = vadd.f32 %v1714_v38, %v1574_v45 }
 0x8c6   :  { %v1942_v49 = vpop.f32.mrf.mxu1 }
 0x8c7   :  { %v1581_v52 = vmul.f32 0.70710677, %v1575_v46  ;;  %v1579_v54 = vmul.f32 0.5, %v1575_v46 }
 0x8c9   :  { %2028 = verf.f32 %v1581_v52 }
 0x8d2   :  { %v2027_v15 = vpop.eup %2026 }
 0x8d3   :  { %v1584_v40 = vadd.f32 1.0, %v2027_v15 }
 0x8d5   :  { %v1586_v56 = vmul.f32 %v1584_v40, %v1578_v51 }
 0x8d6   :  { %v2029_v50 = vpop.eup %2028 }
 0x8d7   :  { %v1585_v55 = vadd.f32 1.0, %v2029_v50 }
 0x8d9   :  { %v1587_v57 = vmul.f32 %v1585_v55, %v1579_v54 }
 0x8db   :  { %v1588_v60 = vpack.c.bf16 %v1587_v57, %v1586_v56 }
 0x8dd   :  { %1952 = vmatmul.mubr.msk.bf16.vlgmr.msra.gmra.mxu0 %vm1628_vm4, %v1588_v60 }
 0x99d   :  { %v1666_v62 = vpop.f32.mrf.mxu0 }
 0x99e   :  { %v1667_v63 = vadd.f32 %v1718_v61, %v1666_v62 }
 0x99f   :  { %v1953_v2 = vpop.f32.mrf.mxu0 }
 0x9a0   :  { %v1673_v0 = vadd.f32 %v1667_v63, %v2405_v59 }
 0x9a1   :  { %v1669_v3 = vpop.f32.mrf.mxu0 }
 0x9a2   :  { %1675 = vst.msk [vmem:[%s2479_s12] sm:$0xff] %vm58_vm0, %v1673_v0  ;;  %v1670_v4 = vadd.f32 %v1718_v61, %v1669_v3 }
 0x9a3   :  { %v1954_v5 = vpop.f32.mrf.mxu0 }
 0x9a4   :  { %v1674_v6 = vadd.f32 %v1670_v4, %v2414_v8 }
 0x9a6   :  { %1676 = vst.msk [vmem:[%s2479_s12 + $0x8] sm:$0xff] %vm58_vm0, %v1674_v6 }
 0x9a7   :  { %1681 = vsyncpa [#allocation3], 1 }

</bundles_post_ra>
